<compile_context>
chip_gen: v7x
topology: tpu7x:2x2x1
jax: 0.10.0
libtpu: 0.0.40
codegen_flags: <defaults>
</compile_context>

<pallas_src>
import math

import jax
import jax.numpy as jnp
from jax.experimental import pallas as pl
from jax.experimental.pallas import tpu as pltpu

LANE = 128
_BN_EPS = 1e-5


def _round_up(x, m):
    return (x + m - 1) // m * m


# ----------------------------------------------------------------------------
# Fused whole-Block kernel
# ----------------------------------------------------------------------------

def _make_block_kernel(L, Lout, stride, relu_flags, has_conv_skip, use_scratch):
    """Builds the fused Block kernel (one grid step == one batch element)."""
    n_reps = len(relu_flags)

    def kernel(*refs):
        it = iter(refs)
        x_ref = next(it)                                   # (L+2, Cin_p) f32, zero halo
        rep_refs = [(next(it), next(it)) for _ in range(n_reps)]
        skip_refs = (next(it), next(it)) if has_conv_skip else None
        o_ref = next(it)                                   # (Lout, Cout_p) f32
        scr_ref = next(it) if use_scratch else None        # (L+2, Cscr) f32

        def sepconv_bn(ap, w_ref, sh_ref, pre_relu):
            # ap: (L+2, Ci_p) fp32 with zero halo rows.
            a = jnp.maximum(ap, 0.0) if pre_relu else ap   # relu(0)=0 -> halo safe
            ab = a.astype(jnp.bfloat16)                    # cast once per rep
            # pack the 3 taps along K -> single MXU matmul with K = 3*Ci_p
            acat = jnp.concatenate(
                [ab[0:L, :], ab[1:L + 1, :], ab[2:L + 2, :]], axis=1)
            y = jnp.dot(acat, w_ref[...], preferred_element_type=jnp.float32)
            return y + sh_ref[...]                         # BN scale already in W

        ap = x_ref[...]
        y = None
        for i, (w_ref, sh_ref) in enumerate(rep_refs):
            y = sepconv_bn(ap, w_ref, sh_ref, relu_flags[i])
            if i + 1 < n_reps:
                c = y.shape[1]
                # re-pad (zero halo) through VMEM scratch for the next rep
                scr_ref[pl.ds(0, 1), pl.ds(0, c)] = jnp.zeros((1, c), jnp.float32)
                scr_ref[pl.ds(L + 1, 1), pl.ds(0, c)] = jnp.zeros((1, c), jnp.float32)
                scr_ref[pl.ds(1, L), pl.ds(0, c)] = y
                ap = scr_ref[pl.ds(0, L + 2), pl.ds(0, c)]

        if stride == 1:
            x_in = x_ref[pl.ds(1, L), :]                   # raw block input (interior)
            if has_conv_skip:
                sw_ref, ssh_ref = skip_refs
                skip = jnp.dot(x_in.astype(jnp.bfloat16), sw_ref[...],
                               preferred_element_type=jnp.float32) + ssh_ref[...]
            else:
                skip = x_in                                # identity residual
            o_ref[...] = y + skip
        else:
            c = y.shape[1]
            # MaxPool1d(k=3, stride, padding=1): -inf halo + strided taps in VMEM
            ninf = jnp.full((1, c), -jnp.inf, jnp.float32)
            scr_ref[pl.ds(0, 1), pl.ds(0, c)] = ninf
            scr_ref[pl.ds(L + 1, 1), pl.ds(0, c)] = ninf
            scr_ref[pl.ds(1, L), pl.ds(0, c)] = y
            p0 = scr_ref[pl.ds(0, Lout, stride=stride), pl.ds(0, c)]
            p1 = scr_ref[pl.ds(1, Lout, stride=stride), pl.ds(0, c)]
            p2 = scr_ref[pl.ds(2, Lout, stride=stride), pl.ds(0, c)]
            pooled = jnp.maximum(jnp.maximum(p0, p1), p2)
            # strided 1x1 skip conv straight from the padded input
            sw_ref, ssh_ref = skip_refs
            xs = x_ref[pl.ds(1, Lout, stride=stride), :]
            skip = jnp.dot(xs.astype(jnp.bfloat16), sw_ref[...],
                           preferred_element_type=jnp.float32) + ssh_ref[...]
            o_ref[...] = pooled + skip

    return kernel


# ----------------------------------------------------------------------------
# Block forward (channels-last, one pallas_call)
# ----------------------------------------------------------------------------

def block_forward_nlc(params, x, *, slice_output=True):
    """x: (N, L, C) fp32 with cin <= C <= cin_pad (extra channels must be zero).

    Returns (N, Lout, Cout) fp32 (or (N, Lout, Cout_pad) if slice_output=False).
    """
    N, L, c_given = x.shape
    cin, cin_p = params['cin'], params['cin_pad']
    cout, cout_p = params['cout'], params['cout_pad']
    stride = params['stride']
    assert cin <= c_given <= cin_p, (c_given, cin, cin_p)
    Lout = (L - 1) // stride + 1

    # single zero-padded (halo + lane-dense channels) copy feeds the whole block
    xp = jnp.pad(x, ((0, 0), (1, 1), (0, cin_p - c_given)))

    operands = [xp]
    in_specs = [pl.BlockSpec((None, L + 2, cin_p), lambda n: (n, 0, 0))]
    for w, sh in params['reps']:
        operands += [w, sh]
        in_specs += [pl.BlockSpec(w.shape, lambda n: (0, 0)),
                     pl.BlockSpec(sh.shape, lambda n: (0, 0))]
    has_conv_skip = params['skip'] is not None
    if has_conv_skip:
        sw, ssh = params['skip']
        operands += [sw, ssh]
        in_specs += [pl.BlockSpec(sw.shape, lambda n: (0, 0)),
                     pl.BlockSpec(ssh.shape, lambda n: (0, 0))]

    n_reps = len(params['reps'])
    use_scratch = (n_reps > 1) or (stride != 1)
    scratch_shapes = []
    if use_scratch:
        cscr = max(w.shape[1] for (w, _) in params['reps'])
        scratch_shapes = [pltpu.VMEM((L + 2, cscr), jnp.float32)]

    kern = _make_block_kernel(L, Lout, stride, params['relu'],
                              has_conv_skip, use_scratch)
    y = pl.pallas_call(
        kern,
        out_shape=jax.ShapeDtypeStruct((N, Lout, cout_p), jnp.float32),
        grid_spec=pltpu.PrefetchScalarGridSpec(
            num_scalar_prefetch=0,
            grid=(N,),
            in_specs=in_specs,
            out_specs=pl.BlockSpec((None, Lout, cout_p), lambda n: (n, 0, 0)),
            scratch_shapes=scratch_shapes),
        compiler_params=pltpu.CompilerParams(
            dimension_semantics=("parallel",)),
    )(*operands)

    if slice_output and cout_p != cout:
        y = y[:, :, :cout]
    return y


def block_apply_ncl(params, x_ncl):
    """PyTorch interface: x (N, C, L) -> (N, C_out, L_out)."""
    x = jnp.transpose(x_ncl, (0, 2, 1)).astype(jnp.float32)
    y = block_forward_nlc(params, x)
    return jnp.transpose(y, (0, 2, 1))


# ----------------------------------------------------------------------------
# Parameter construction / folding (done ONCE at init)
# ----------------------------------------------------------------------------

def _fold_bn(bn, eps=_BN_EPS):
    gamma, beta, mean, var = bn
    scale = gamma / jnp.sqrt(var + eps)
    shift = beta - mean * scale
    return scale, shift


def _prep_rep(dw, pw, bn, cin_p, cout_p):
    """Fold depthwise taps + BN scale into one packed (3*Cin_p, Cout_p) bf16 matrix."""
    cin, cout = dw.shape[0], pw.shape[0]
    scale, shift = _fold_bn(bn)
    pwm = pw[:, :, 0].T * scale[None, :]                       # (cin, cout), BN folded
    taps = []
    for k in range(3):
        wk = dw[:, 0, k][:, None] * pwm                        # diag(dw_k) @ PW^T * scale
        taps.append(jnp.pad(wk, ((0, cin_p - cin), (0, cout_p - cout))))
    w_packed = jnp.concatenate(taps, axis=0).astype(jnp.bfloat16)
    sh = jnp.pad(shift, (0, cout_p - cout)).reshape(1, cout_p).astype(jnp.float32)
    return w_packed, sh


def _prep_skip(w, bn, cin_p, cout_p):
    cout, cin = w.shape[0], w.shape[1]
    scale, shift = _fold_bn(bn)
    wm = w[:, :, 0].T * scale[None, :]
    wm = jnp.pad(wm, ((0, cin_p - cin), (0, cout_p - cout))).astype(jnp.bfloat16)
    sh = jnp.pad(shift, (0, cout_p - cout)).reshape(1, cout_p).astype(jnp.float32)
    return wm, sh


class KeyGen:
    def __init__(self, seed=0):
        self.key = jax.random.PRNGKey(seed)

    def __call__(self):
        self.key, k = jax.random.split(self.key)
        return k


def _conv_w(kg, cout, cin, k):
    std = math.sqrt(2.0 / (k * max(cin, 1)))
    return jax.random.normal(kg(), (cout, cin, k), jnp.float32) * std


def _bn_params(c):
    # (gamma, beta, running_mean, running_var) -- PyTorch defaults, eval mode.
    return (jnp.ones((c,), jnp.float32), jnp.zeros((c,), jnp.float32),
            jnp.zeros((c,), jnp.float32), jnp.ones((c,), jnp.float32))


def block_init(kg, in_f, out_f, reps, stride=1, start_with_relu=True,
               grow_first=True):
    """Mirrors Block.__init__; returns (folded params, raw params for reference)."""
    if grow_first:
        chans = [(in_f, out_f)] + [(out_f, out_f)] * (reps - 1)
    else:
        chans = [(in_f, in_f)] * (reps - 1) + [(in_f, out_f)]
    raw_reps = []
    for ci, co in chans:
        dw = _conv_w(kg, ci, 1, 3)                 # depthwise (groups=ci)
        pw = _conv_w(kg, co, ci, 1)                # pointwise
        raw_reps.append((dw, pw, _bn_params(co)))
    raw_skip = None
    if out_f != in_f or stride != 1:
        raw_skip = (_conv_w(kg, out_f, in_f, 1), _bn_params(out_f))
    relu_flags = [bool(start_with_relu)] + [True] * (reps - 1)

    cin_pad, cout_pad = _round_up(in_f, LANE), _round_up(out_f, LANE)
    prepped = [_prep_rep(dw, pw, bn, _round_up(ci, LANE), _round_up(co, LANE))
               for (dw, pw, bn), (ci, co) in zip(raw_reps, chans)]
    skip_p = None
    if raw_skip is not None:
        skip_p = _prep_skip(raw_skip[0], raw_skip[1], cin_pad, cout_pad)

    params = dict(cin=in_f, cout=out_f, cin_pad=cin_pad, cout_pad=cout_pad,
                  reps=prepped, relu=relu_flags, stride=int(stride), skip=skip_p)
    raw = dict(reps=raw_reps, skip=raw_skip, relu=relu_flags, stride=int(stride))
    return params, raw


# ----------------------------------------------------------------------------
# Pure-JAX fp32 reference (for validation only)
# ----------------------------------------------------------------------------

def _ref_block(raw, x):
    N, L, _ = x.shape
    stride = raw['stride']
    inp = x
    for (dw, pw, bn), pre_relu in zip(raw['reps'], raw['relu']):
        if pre_relu:
            x = jnp.maximum(x, 0.0)
        xp = jnp.pad(x, ((0, 0), (1, 1), (0, 0)))
        dwout = sum(xp[:, k:k + L, :] * dw[:, 0, k][None, None, :] for k in range(3))
        y = jnp.einsum('nlc,oc->nlo', dwout, pw[:, :, 0])
        gamma, beta, mean, var = bn
        x = (y - mean) / jnp.sqrt(var + _BN_EPS) * gamma + beta
    if stride != 1:
        Lout = (L - 1) // stride + 1
        xp = jnp.pad(x, ((0, 0), (1, 1), (0, 0)), constant_values=-jnp.inf)
        hi = stride * (Lout - 1)
        x = jnp.maximum(jnp.maximum(xp[:, 0:hi + 1:stride, :],
                                    xp[:, 1:hi + 2:stride, :]),
                        xp[:, 2:hi + 3:stride, :])
    if raw['skip'] is not None:
        w, bn = raw['skip']
        s = jnp.einsum('nlc,oc->nlo', inp[:, ::stride, :], w[:, :, 0])
        gamma, beta, mean, var = bn
        skip = (s - mean) / jnp.sqrt(var + _BN_EPS) * gamma + beta
    else:
        skip = inp
    return x + skip


# ----------------------------------------------------------------------------

if __name__ == "__main__":
    kg = KeyGen(0)

    # Three configurations covering every branch of Block:
    #  b1: strided block, conv skip + maxpool tail (start_with_relu=False)
    #  b2: identity-skip middle block (stride=1, in==out)
    #  b3: grow_first=False block with conv skip at stride 1
    b1, r1 = block_init(kg, 32, 64, reps=2, stride=2, start_with_relu=False,
                        grow_first=True)
    b2, r2 = block_init(kg, 64, 64, reps=3, stride=1, start_with_relu=True,
                        grow_first=True)
    b3, r3 = block_init(kg, 64, 128, reps=2, stride=1, start_with_relu=True,
                        grow_first=False)

    x_ncl = jax.random.normal(jax.random.PRNGKey(0), (2, 32, 64), jnp.float32)

    @jax.jit
    def run(xx):
        # channels-last through the whole chain; transpose only at the edges.
        x = jnp.transpose(xx, (0, 2, 1))
        x = block_forward_nlc(b1, x, slice_output=False)   # padded cols stay zero
        x = block_forward_nlc(b2, x, slice_output=False)
        x = block_forward_nlc(b3, x, slice_output=True)
        return jnp.transpose(x, (0, 2, 1))

    out = jax.block_until_ready(run(x_ncl))
    assert out.shape == (2, 128, 32), out.shape
    assert bool(jnp.all(jnp.isfinite(out)))

    # fp32 reference check (loose tolerance: weights/activations hit the MXU in bf16)
    @jax.jit
    def ref(xx):
        x = jnp.transpose(xx, (0, 2, 1))
        x = _ref_block(r1, x)
        x = _ref_block(r2, x)
        x = _ref_block(r3, x)
        return jnp.transpose(x, (0, 2, 1))

    expected = jax.block_until_ready(ref(x_ncl))
    err = float(jnp.max(jnp.abs(out - expected)))
    scale = float(jnp.max(jnp.abs(expected)))
    assert err <= 0.05 * max(1.0, scale), (err, scale)

    print("KERNEL_OK")
</pallas_src>

<mosaic_0001>
module attributes {stable_mosaic.version = 11 : i64} {
  func.func @kernel(%arg0: i32, %arg1: memref<1x66x128xf32, #tpu.memory_space<vmem>>, %arg2: memref<384x128xbf16, #tpu.memory_space<vmem>>, %arg3: memref<1x128xf32, #tpu.memory_space<vmem>>, %arg4: memref<384x128xbf16, #tpu.memory_space<vmem>>, %arg5: memref<1x128xf32, #tpu.memory_space<vmem>>, %arg6: memref<128x128xbf16, #tpu.memory_space<vmem>>, %arg7: memref<1x128xf32, #tpu.memory_space<vmem>>, %arg8: memref<1x32x128xf32, #tpu.memory_space<vmem>>, %arg9: memref<66x128xf32, #tpu.memory_space<vmem>>) attributes {dimension_semantics = [#tpu.dimension_semantics<parallel>], iteration_bounds = array<i64: 2>, scalar_prefetch = 0 : i64, scratch_operands = 1 : i64, tpu.core_type = #tpu.core_type<tc>, window_params = [{transform_indices = @transform_0, window_bounds = array<i64: 1, 66, 128>}, {pipeline_mode = #tpu.pipeline_mode<synchronous>, transform_indices = @transform_1, window_bounds = array<i64: 384, 128>}, {pipeline_mode = #tpu.pipeline_mode<synchronous>, transform_indices = @transform_2, window_bounds = array<i64: 1, 128>}, {pipeline_mode = #tpu.pipeline_mode<synchronous>, transform_indices = @transform_3, window_bounds = array<i64: 384, 128>}, {pipeline_mode = #tpu.pipeline_mode<synchronous>, transform_indices = @transform_4, window_bounds = array<i64: 1, 128>}, {pipeline_mode = #tpu.pipeline_mode<synchronous>, transform_indices = @transform_5, window_bounds = array<i64: 128, 128>}, {pipeline_mode = #tpu.pipeline_mode<synchronous>, transform_indices = @transform_6, window_bounds = array<i64: 1, 128>}, {transform_indices = @transform_7, window_bounds = array<i64: 1, 32, 128>}]} {
    %c0 = arith.constant 0 : index
    %c0_0 = arith.constant 0 : index
    %c0_1 = arith.constant 0 : index
    %0 = vector.load %arg1[%c0, %c0_0, %c0_1] : memref<1x66x128xf32, #tpu.memory_space<vmem>>, vector<1x66x128xf32>
    %1 = vector.shape_cast %0 : vector<1x66x128xf32> to vector<66x128xf32>
    %2 = arith.truncf %1 : vector<66x128xf32> to vector<66x128xbf16>
    %3 = vector.extract_strided_slice %2 {offsets = [0, 0], sizes = [64, 128], strides = [1, 1]} : vector<66x128xbf16> to vector<64x128xbf16>
    %4 = vector.extract_strided_slice %2 {offsets = [1, 0], sizes = [64, 128], strides = [1, 1]} : vector<66x128xbf16> to vector<64x128xbf16>
    %5 = vector.extract_strided_slice %2 {offsets = [2, 0], sizes = [64, 128], strides = [1, 1]} : vector<66x128xbf16> to vector<64x128xbf16>
    %6 = tpu.concatenate %3, %4, %5 in 1 : vector<64x128xbf16>, vector<64x128xbf16>, vector<64x128xbf16> -> vector<64x384xbf16>
    %c0_2 = arith.constant 0 : index
    %c0_3 = arith.constant 0 : index
    %7 = vector.load %arg2[%c0_2, %c0_3] : memref<384x128xbf16, #tpu.memory_space<vmem>>, vector<384x128xbf16>
    %cst = arith.constant dense<0.000000e+00> : vector<64x128xf32>
    %8 = tpu.matmul %6, %7, %cst {dimension_numbers = #tpu.dot_dimension_numbers<[1], [0], [0], [1], [0, 0, 1, 1], [], []>} : vector<64x384xbf16>, vector<384x128xbf16>, vector<64x128xf32> -> vector<64x128xf32>
    %c0_4 = arith.constant 0 : index
    %c0_5 = arith.constant 0 : index
    %9 = vector.load %arg3[%c0_4, %c0_5] : memref<1x128xf32, #tpu.memory_space<vmem>>, vector<1x128xf32>
    %10 = vector.broadcast %9 : vector<1x128xf32> to vector<64x128xf32>
    %11 = arith.addf %8, %10 : vector<64x128xf32>
    %cst_6 = arith.constant 0.000000e+00 : f32
    %12 = vector.broadcast %cst_6 : f32 to vector<1x128xf32>
    %c0_7 = arith.constant 0 : index
    %c0_8 = arith.constant 0 : index
    %13 = vector.load %arg9[%c0_7, %c0_8] : memref<66x128xf32, #tpu.memory_space<vmem>>, vector<1x128xf32>
    tpu.vector_store %arg9[%c0_7, %c0_8], %12 {strides = array<i32>} : memref<66x128xf32, #tpu.memory_space<vmem>>, vector<1x128xf32>,
    %cst_9 = arith.constant 0.000000e+00 : f32
    %14 = vector.broadcast %cst_9 : f32 to vector<1x128xf32>
    %c65 = arith.constant 65 : index
    %c0_10 = arith.constant 0 : index
    %15 = vector.load %arg9[%c65, %c0_10] : memref<66x128xf32, #tpu.memory_space<vmem>>, vector<1x128xf32>
    tpu.vector_store %arg9[%c65, %c0_10], %14 {strides = array<i32>} : memref<66x128xf32, #tpu.memory_space<vmem>>, vector<1x128xf32>,
    %c1 = arith.constant 1 : index
    %c0_11 = arith.constant 0 : index
    %16 = vector.load %arg9[%c1, %c0_11] : memref<66x128xf32, #tpu.memory_space<vmem>>, vector<64x128xf32>
    tpu.vector_store %arg9[%c1, %c0_11], %11 {strides = array<i32>} : memref<66x128xf32, #tpu.memory_space<vmem>>, vector<64x128xf32>,
    %c0_12 = arith.constant 0 : index
    %c0_13 = arith.constant 0 : index
    %17 = vector.load %arg9[%c0_12, %c0_13] : memref<66x128xf32, #tpu.memory_space<vmem>>, vector<66x128xf32>
    %cst_14 = arith.constant 0.000000e+00 : f32
    %18 = vector.broadcast %cst_14 : f32 to vector<66x128xf32>
    %19 = arith.maximumf %17, %18 : vector<66x128xf32>
    %20 = arith.truncf %19 : vector<66x128xf32> to vector<66x128xbf16>
    %21 = vector.extract_strided_slice %20 {offsets = [0, 0], sizes = [64, 128], strides = [1, 1]} : vector<66x128xbf16> to vector<64x128xbf16>
    %22 = vector.extract_strided_slice %20 {offsets = [1, 0], sizes = [64, 128], strides = [1, 1]} : vector<66x128xbf16> to vector<64x128xbf16>
    %23 = vector.extract_strided_slice %20 {offsets = [2, 0], sizes = [64, 128], strides = [1, 1]} : vector<66x128xbf16> to vector<64x128xbf16>
    %24 = tpu.concatenate %21, %22, %23 in 1 : vector<64x128xbf16>, vector<64x128xbf16>, vector<64x128xbf16> -> vector<64x384xbf16>
    %c0_15 = arith.constant 0 : index
    %c0_16 = arith.constant 0 : index
    %25 = vector.load %arg4[%c0_15, %c0_16] : memref<384x128xbf16, #tpu.memory_space<vmem>>, vector<384x128xbf16>
    %cst_17 = arith.constant dense<0.000000e+00> : vector<64x128xf32>
    %26 = tpu.matmul %24, %25, %cst_17 {dimension_numbers = #tpu.dot_dimension_numbers<[1], [0], [0], [1], [0, 0, 1, 1], [], []>} : vector<64x384xbf16>, vector<384x128xbf16>, vector<64x128xf32> -> vector<64x128xf32>
    %c0_18 = arith.constant 0 : index
    %c0_19 = arith.constant 0 : index
    %27 = vector.load %arg5[%c0_18, %c0_19] : memref<1x128xf32, #tpu.memory_space<vmem>>, vector<1x128xf32>
    %28 = vector.broadcast %27 : vector<1x128xf32> to vector<64x128xf32>
    %29 = arith.addf %26, %28 : vector<64x128xf32>
    %cst_20 = arith.constant 0xFF800000 : f32
    %30 = vector.broadcast %cst_20 : f32 to vector<1x128xf32>
    %c0_21 = arith.constant 0 : index
    %c0_22 = arith.constant 0 : index
    %31 = vector.load %arg9[%c0_21, %c0_22] : memref<66x128xf32, #tpu.memory_space<vmem>>, vector<1x128xf32>
    tpu.vector_store %arg9[%c0_21, %c0_22], %30 {strides = array<i32>} : memref<66x128xf32, #tpu.memory_space<vmem>>, vector<1x128xf32>,
    %c65_23 = arith.constant 65 : index
    %c0_24 = arith.constant 0 : index
    %32 = vector.load %arg9[%c65_23, %c0_24] : memref<66x128xf32, #tpu.memory_space<vmem>>, vector<1x128xf32>
    tpu.vector_store %arg9[%c65_23, %c0_24], %30 {strides = array<i32>} : memref<66x128xf32, #tpu.memory_space<vmem>>, vector<1x128xf32>,
    %c1_25 = arith.constant 1 : index
    %c0_26 = arith.constant 0 : index
    %33 = vector.load %arg9[%c1_25, %c0_26] : memref<66x128xf32, #tpu.memory_space<vmem>>, vector<64x128xf32>
    tpu.vector_store %arg9[%c1_25, %c0_26], %29 {strides = array<i32>} : memref<66x128xf32, #tpu.memory_space<vmem>>, vector<64x128xf32>,
    %c0_27 = arith.constant 0 : index
    %c0_28 = arith.constant 0 : index
    %34 = tpu.strided_load %arg9[%c0_27, %c0_28] {strides = array<i32: 2, 1>} : memref<66x128xf32, #tpu.memory_space<vmem>>, vector<32x128xf32>
    %c1_29 = arith.constant 1 : index
    %c0_30 = arith.constant 0 : index
    %35 = tpu.strided_load %arg9[%c1_29, %c0_30] {strides = array<i32: 2, 1>} : memref<66x128xf32, #tpu.memory_space<vmem>>, vector<32x128xf32>
    %c2 = arith.constant 2 : index
    %c0_31 = arith.constant 0 : index
    %36 = tpu.strided_load %arg9[%c2, %c0_31] {strides = array<i32: 2, 1>} : memref<66x128xf32, #tpu.memory_space<vmem>>, vector<32x128xf32>
    %37 = arith.maximumf %34, %35 : vector<32x128xf32>
    %38 = arith.maximumf %37, %36 : vector<32x128xf32>
    %c0_32 = arith.constant 0 : index
    %c1_33 = arith.constant 1 : index
    %c0_34 = arith.constant 0 : index
    %39 = tpu.strided_load %arg1[%c0_32, %c1_33, %c0_34] {strides = array<i32: 1, 2, 1>} : memref<1x66x128xf32, #tpu.memory_space<vmem>>, vector<1x32x128xf32>
    %40 = vector.shape_cast %39 : vector<1x32x128xf32> to vector<32x128xf32>
    %41 = arith.truncf %40 : vector<32x128xf32> to vector<32x128xbf16>
    %c0_35 = arith.constant 0 : index
    %c0_36 = arith.constant 0 : index
    %42 = vector.load %arg6[%c0_35, %c0_36] : memref<128x128xbf16, #tpu.memory_space<vmem>>, vector<128x128xbf16>
    %cst_37 = arith.constant dense<0.000000e+00> : vector<32x128xf32>
    %43 = tpu.matmul %41, %42, %cst_37 {dimension_numbers = #tpu.dot_dimension_numbers<[1], [0], [0], [1], [0, 0, 1, 1], [], []>} : vector<32x128xbf16>, vector<128x128xbf16>, vector<32x128xf32> -> vector<32x128xf32>
    %c0_38 = arith.constant 0 : index
    %c0_39 = arith.constant 0 : index
    %44 = vector.load %arg7[%c0_38, %c0_39] : memref<1x128xf32, #tpu.memory_space<vmem>>, vector<1x128xf32>
    %45 = vector.broadcast %44 : vector<1x128xf32> to vector<32x128xf32>
    %46 = arith.addf %43, %45 : vector<32x128xf32>
    %47 = arith.addf %38, %46 : vector<32x128xf32>
    %c0_40 = arith.constant 0 : index
    %c0_41 = arith.constant 0 : index
    %c0_42 = arith.constant 0 : index
    %48 = vector.load %arg8[%c0_40, %c0_41, %c0_42] : memref<1x32x128xf32, #tpu.memory_space<vmem>>, vector<1x32x128xf32>
    %49 = vector.shape_cast %48 : vector<1x32x128xf32> to vector<32x128xf32>
    %50 = vector.shape_cast %47 : vector<32x128xf32> to vector<1x32x128xf32>
    tpu.vector_store %arg8[%c0_40, %c0_41, %c0_42], %50 {strides = array<i32>} : memref<1x32x128xf32, #tpu.memory_space<vmem>>, vector<1x32x128xf32>,
    return
  }
  func.func @transform_0(%arg0: i32) -> (i32, i32, i32) {
    %c0_i32 = arith.constant 0 : i32
    %c0_i32_0 = arith.constant 0 : i32
    %c0_i32_1 = arith.constant 0 : i32
    return %arg0, %c0_i32, %c0_i32_0 : i32, i32, i32
  }
  func.func @transform_1(%arg0: i32) -> (i32, i32) {
    %c0_i32 = arith.constant 0 : i32
    %c0_i32_0 = arith.constant 0 : i32
    %c0_i32_1 = arith.constant 0 : i32
    return %c0_i32, %c0_i32_0 : i32, i32
  }
  func.func @transform_2(%arg0: i32) -> (i32, i32) {
    %c0_i32 = arith.constant 0 : i32
    %c0_i32_0 = arith.constant 0 : i32
    %c0_i32_1 = arith.constant 0 : i32
    return %c0_i32, %c0_i32_0 : i32, i32
  }
  func.func @transform_3(%arg0: i32) -> (i32, i32) {
    %c0_i32 = arith.constant 0 : i32
    %c0_i32_0 = arith.constant 0 : i32
    %c0_i32_1 = arith.constant 0 : i32
    return %c0_i32, %c0_i32_0 : i32, i32
  }
  func.func @transform_4(%arg0: i32) -> (i32, i32) {
    %c0_i32 = arith.constant 0 : i32
    %c0_i32_0 = arith.constant 0 : i32
    %c0_i32_1 = arith.constant 0 : i32
    return %c0_i32, %c0_i32_0 : i32, i32
  }
  func.func @transform_5(%arg0: i32) -> (i32, i32) {
    %c0_i32 = arith.constant 0 : i32
    %c0_i32_0 = arith.constant 0 : i32
    %c0_i32_1 = arith.constant 0 : i32
    return %c0_i32, %c0_i32_0 : i32, i32
  }
  func.func @transform_6(%arg0: i32) -> (i32, i32) {
    %c0_i32 = arith.constant 0 : i32
    %c0_i32_0 = arith.constant 0 : i32
    %c0_i32_1 = arith.constant 0 : i32
    return %c0_i32, %c0_i32_0 : i32, i32
  }
  func.func @transform_7(%arg0: i32) -> (i32, i32, i32) {
    %c0_i32 = arith.constant 0 : i32
    %c0_i32_0 = arith.constant 0 : i32
    %c0_i32_1 = arith.constant 0 : i32
    return %arg0, %c0_i32, %c0_i32_0 : i32, i32, i32
  }
}

module attributes {stable_mosaic.version = 11 : i64} {
  func.func @kernel(%arg0: i32, %arg1: memref<1x34x128xf32, #tpu.memory_space<vmem>>, %arg2: memref<384x128xbf16, #tpu.memory_space<vmem>>, %arg3: memref<1x128xf32, #tpu.memory_space<vmem>>, %arg4: memref<384x128xbf16, #tpu.memory_space<vmem>>, %arg5: memref<1x128xf32, #tpu.memory_space<vmem>>, %arg6: memref<384x128xbf16, #tpu.memory_space<vmem>>, %arg7: memref<1x128xf32, #tpu.memory_space<vmem>>, %arg8: memref<1x32x128xf32, #tpu.memory_space<vmem>>, %arg9: memref<34x128xf32, #tpu.memory_space<vmem>>) attributes {dimension_semantics = [#tpu.dimension_semantics<parallel>], iteration_bounds = array<i64: 2>, scalar_prefetch = 0 : i64, scratch_operands = 1 : i64, tpu.core_type = #tpu.core_type<tc>, window_params = [{transform_indices = @transform_0, window_bounds = array<i64: 1, 34, 128>}, {pipeline_mode = #tpu.pipeline_mode<synchronous>, transform_indices = @transform_1, window_bounds = array<i64: 384, 128>}, {pipeline_mode = #tpu.pipeline_mode<synchronous>, transform_indices = @transform_2, window_bounds = array<i64: 1, 128>}, {pipeline_mode = #tpu.pipeline_mode<synchronous>, transform_indices = @transform_3, window_bounds = array<i64: 384, 128>}, {pipeline_mode = #tpu.pipeline_mode<synchronous>, transform_indices = @transform_4, window_bounds = array<i64: 1, 128>}, {pipeline_mode = #tpu.pipeline_mode<synchronous>, transform_indices = @transform_5, window_bounds = array<i64: 384, 128>}, {pipeline_mode = #tpu.pipeline_mode<synchronous>, transform_indices = @transform_6, window_bounds = array<i64: 1, 128>}, {transform_indices = @transform_7, window_bounds = array<i64: 1, 32, 128>}]} {
    %c0 = arith.constant 0 : index
    %c0_0 = arith.constant 0 : index
    %c0_1 = arith.constant 0 : index
    %0 = vector.load %arg1[%c0, %c0_0, %c0_1] : memref<1x34x128xf32, #tpu.memory_space<vmem>>, vector<1x34x128xf32>
    %1 = vector.shape_cast %0 : vector<1x34x128xf32> to vector<34x128xf32>
    %cst = arith.constant 0.000000e+00 : f32
    %2 = vector.broadcast %cst : f32 to vector<34x128xf32>
    %3 = arith.maximumf %1, %2 : vector<34x128xf32>
    %4 = arith.truncf %3 : vector<34x128xf32> to vector<34x128xbf16>
    %5 = vector.extract_strided_slice %4 {offsets = [0, 0], sizes = [32, 128], strides = [1, 1]} : vector<34x128xbf16> to vector<32x128xbf16>
    %6 = vector.extract_strided_slice %4 {offsets = [1, 0], sizes = [32, 128], strides = [1, 1]} : vector<34x128xbf16> to vector<32x128xbf16>
    %7 = vector.extract_strided_slice %4 {offsets = [2, 0], sizes = [32, 128], strides = [1, 1]} : vector<34x128xbf16> to vector<32x128xbf16>
    %8 = tpu.concatenate %5, %6, %7 in 1 : vector<32x128xbf16>, vector<32x128xbf16>, vector<32x128xbf16> -> vector<32x384xbf16>
    %c0_2 = arith.constant 0 : index
    %c0_3 = arith.constant 0 : index
    %9 = vector.load %arg2[%c0_2, %c0_3] : memref<384x128xbf16, #tpu.memory_space<vmem>>, vector<384x128xbf16>
    %cst_4 = arith.constant dense<0.000000e+00> : vector<32x128xf32>
    %10 = tpu.matmul %8, %9, %cst_4 {dimension_numbers = #tpu.dot_dimension_numbers<[1], [0], [0], [1], [0, 0, 1, 1], [], []>} : vector<32x384xbf16>, vector<384x128xbf16>, vector<32x128xf32> -> vector<32x128xf32>
    %c0_5 = arith.constant 0 : index
    %c0_6 = arith.constant 0 : index
    %11 = vector.load %arg3[%c0_5, %c0_6] : memref<1x128xf32, #tpu.memory_space<vmem>>, vector<1x128xf32>
    %12 = vector.broadcast %11 : vector<1x128xf32> to vector<32x128xf32>
    %13 = arith.addf %10, %12 : vector<32x128xf32>
    %cst_7 = arith.constant 0.000000e+00 : f32
    %14 = vector.broadcast %cst_7 : f32 to vector<1x128xf32>
    %c0_8 = arith.constant 0 : index
    %c0_9 = arith.constant 0 : index
    %15 = vector.load %arg9[%c0_8, %c0_9] : memref<34x128xf32, #tpu.memory_space<vmem>>, vector<1x128xf32>
    tpu.vector_store %arg9[%c0_8, %c0_9], %14 {strides = array<i32>} : memref<34x128xf32, #tpu.memory_space<vmem>>, vector<1x128xf32>,
    %cst_10 = arith.constant 0.000000e+00 : f32
    %16 = vector.broadcast %cst_10 : f32 to vector<1x128xf32>
    %c33 = arith.constant 33 : index
    %c0_11 = arith.constant 0 : index
    %17 = vector.load %arg9[%c33, %c0_11] : memref<34x128xf32, #tpu.memory_space<vmem>>, vector<1x128xf32>
    tpu.vector_store %arg9[%c33, %c0_11], %16 {strides = array<i32>} : memref<34x128xf32, #tpu.memory_space<vmem>>, vector<1x128xf32>,
    %c1 = arith.constant 1 : index
    %c0_12 = arith.constant 0 : index
    %18 = vector.load %arg9[%c1, %c0_12] : memref<34x128xf32, #tpu.memory_space<vmem>>, vector<32x128xf32>
    tpu.vector_store %arg9[%c1, %c0_12], %13 {strides = array<i32>} : memref<34x128xf32, #tpu.memory_space<vmem>>, vector<32x128xf32>,
    %c0_13 = arith.constant 0 : index
    %c0_14 = arith.constant 0 : index
    %19 = vector.load %arg9[%c0_13, %c0_14] : memref<34x128xf32, #tpu.memory_space<vmem>>, vector<34x128xf32>
    %cst_15 = arith.constant 0.000000e+00 : f32
    %20 = vector.broadcast %cst_15 : f32 to vector<34x128xf32>
    %21 = arith.maximumf %19, %20 : vector<34x128xf32>
    %22 = arith.truncf %21 : vector<34x128xf32> to vector<34x128xbf16>
    %23 = vector.extract_strided_slice %22 {offsets = [0, 0], sizes = [32, 128], strides = [1, 1]} : vector<34x128xbf16> to vector<32x128xbf16>
    %24 = vector.extract_strided_slice %22 {offsets = [1, 0], sizes = [32, 128], strides = [1, 1]} : vector<34x128xbf16> to vector<32x128xbf16>
    %25 = vector.extract_strided_slice %22 {offsets = [2, 0], sizes = [32, 128], strides = [1, 1]} : vector<34x128xbf16> to vector<32x128xbf16>
    %26 = tpu.concatenate %23, %24, %25 in 1 : vector<32x128xbf16>, vector<32x128xbf16>, vector<32x128xbf16> -> vector<32x384xbf16>
    %c0_16 = arith.constant 0 : index
    %c0_17 = arith.constant 0 : index
    %27 = vector.load %arg4[%c0_16, %c0_17] : memref<384x128xbf16, #tpu.memory_space<vmem>>, vector<384x128xbf16>
    %cst_18 = arith.constant dense<0.000000e+00> : vector<32x128xf32>
    %28 = tpu.matmul %26, %27, %cst_18 {dimension_numbers = #tpu.dot_dimension_numbers<[1], [0], [0], [1], [0, 0, 1, 1], [], []>} : vector<32x384xbf16>, vector<384x128xbf16>, vector<32x128xf32> -> vector<32x128xf32>
    %c0_19 = arith.constant 0 : index
    %c0_20 = arith.constant 0 : index
    %29 = vector.load %arg5[%c0_19, %c0_20] : memref<1x128xf32, #tpu.memory_space<vmem>>, vector<1x128xf32>
    %30 = vector.broadcast %29 : vector<1x128xf32> to vector<32x128xf32>
    %31 = arith.addf %28, %30 : vector<32x128xf32>
    %cst_21 = arith.constant 0.000000e+00 : f32
    %32 = vector.broadcast %cst_21 : f32 to vector<1x128xf32>
    %c0_22 = arith.constant 0 : index
    %c0_23 = arith.constant 0 : index
    %33 = vector.load %arg9[%c0_22, %c0_23] : memref<34x128xf32, #tpu.memory_space<vmem>>, vector<1x128xf32>
    tpu.vector_store %arg9[%c0_22, %c0_23], %32 {strides = array<i32>} : memref<34x128xf32, #tpu.memory_space<vmem>>, vector<1x128xf32>,
    %cst_24 = arith.constant 0.000000e+00 : f32
    %34 = vector.broadcast %cst_24 : f32 to vector<1x128xf32>
    %c33_25 = arith.constant 33 : index
    %c0_26 = arith.constant 0 : index
    %35 = vector.load %arg9[%c33_25, %c0_26] : memref<34x128xf32, #tpu.memory_space<vmem>>, vector<1x128xf32>
    tpu.vector_store %arg9[%c33_25, %c0_26], %34 {strides = array<i32>} : memref<34x128xf32, #tpu.memory_space<vmem>>, vector<1x128xf32>,
    %c1_27 = arith.constant 1 : index
    %c0_28 = arith.constant 0 : index
    %36 = vector.load %arg9[%c1_27, %c0_28] : memref<34x128xf32, #tpu.memory_space<vmem>>, vector<32x128xf32>
    tpu.vector_store %arg9[%c1_27, %c0_28], %31 {strides = array<i32>} : memref<34x128xf32, #tpu.memory_space<vmem>>, vector<32x128xf32>,
    %c0_29 = arith.constant 0 : index
    %c0_30 = arith.constant 0 : index
    %37 = vector.load %arg9[%c0_29, %c0_30] : memref<34x128xf32, #tpu.memory_space<vmem>>, vector<34x128xf32>
    %cst_31 = arith.constant 0.000000e+00 : f32
    %38 = vector.broadcast %cst_31 : f32 to vector<34x128xf32>
    %39 = arith.maximumf %37, %38 : vector<34x128xf32>
    %40 = arith.truncf %39 : vector<34x128xf32> to vector<34x128xbf16>
    %41 = vector.extract_strided_slice %40 {offsets = [0, 0], sizes = [32, 128], strides = [1, 1]} : vector<34x128xbf16> to vector<32x128xbf16>
    %42 = vector.extract_strided_slice %40 {offsets = [1, 0], sizes = [32, 128], strides = [1, 1]} : vector<34x128xbf16> to vector<32x128xbf16>
    %43 = vector.extract_strided_slice %40 {offsets = [2, 0], sizes = [32, 128], strides = [1, 1]} : vector<34x128xbf16> to vector<32x128xbf16>
    %44 = tpu.concatenate %41, %42, %43 in 1 : vector<32x128xbf16>, vector<32x128xbf16>, vector<32x128xbf16> -> vector<32x384xbf16>
    %c0_32 = arith.constant 0 : index
    %c0_33 = arith.constant 0 : index
    %45 = vector.load %arg6[%c0_32, %c0_33] : memref<384x128xbf16, #tpu.memory_space<vmem>>, vector<384x128xbf16>
    %cst_34 = arith.constant dense<0.000000e+00> : vector<32x128xf32>
    %46 = tpu.matmul %44, %45, %cst_34 {dimension_numbers = #tpu.dot_dimension_numbers<[1], [0], [0], [1], [0, 0, 1, 1], [], []>} : vector<32x384xbf16>, vector<384x128xbf16>, vector<32x128xf32> -> vector<32x128xf32>
    %c0_35 = arith.constant 0 : index
    %c0_36 = arith.constant 0 : index
    %47 = vector.load %arg7[%c0_35, %c0_36] : memref<1x128xf32, #tpu.memory_space<vmem>>, vector<1x128xf32>
    %48 = vector.broadcast %47 : vector<1x128xf32> to vector<32x128xf32>
    %49 = arith.addf %46, %48 : vector<32x128xf32>
    %c0_37 = arith.constant 0 : index
    %c1_38 = arith.constant 1 : index
    %c0_39 = arith.constant 0 : index
    %50 = vector.load %arg1[%c0_37, %c1_38, %c0_39] : memref<1x34x128xf32, #tpu.memory_space<vmem>>, vector<1x32x128xf32>
    %51 = vector.shape_cast %50 : vector<1x32x128xf32> to vector<32x128xf32>
    %52 = arith.addf %49, %51 : vector<32x128xf32>
    %c0_40 = arith.constant 0 : index
    %c0_41 = arith.constant 0 : index
    %c0_42 = arith.constant 0 : index
    %53 = vector.load %arg8[%c0_40, %c0_41, %c0_42] : memref<1x32x128xf32, #tpu.memory_space<vmem>>, vector<1x32x128xf32>
    %54 = vector.shape_cast %53 : vector<1x32x128xf32> to vector<32x128xf32>
    %55 = vector.shape_cast %52 : vector<32x128xf32> to vector<1x32x128xf32>
    tpu.vector_store %arg8[%c0_40, %c0_41, %c0_42], %55 {strides = array<i32>} : memref<1x32x128xf32, #tpu.memory_space<vmem>>, vector<1x32x128xf32>,
    return
  }
  func.func @transform_0(%arg0: i32) -> (i32, i32, i32) {
    %c0_i32 = arith.constant 0 : i32
    %c0_i32_0 = arith.constant 0 : i32
    %c0_i32_1 = arith.constant 0 : i32
    return %arg0, %c0_i32, %c0_i32_0 : i32, i32, i32
  }
  func.func @transform_1(%arg0: i32) -> (i32, i32) {
    %c0_i32 = arith.constant 0 : i32
    %c0_i32_0 = arith.constant 0 : i32
    %c0_i32_1 = arith.constant 0 : i32
    return %c0_i32, %c0_i32_0 : i32, i32
  }
  func.func @transform_2(%arg0: i32) -> (i32, i32) {
    %c0_i32 = arith.constant 0 : i32
    %c0_i32_0 = arith.constant 0 : i32
    %c0_i32_1 = arith.constant 0 : i32
    return %c0_i32, %c0_i32_0 : i32, i32
  }
  func.func @transform_3(%arg0: i32) -> (i32, i32) {
    %c0_i32 = arith.constant 0 : i32
    %c0_i32_0 = arith.constant 0 : i32
    %c0_i32_1 = arith.constant 0 : i32
    return %c0_i32, %c0_i32_0 : i32, i32
  }
  func.func @transform_4(%arg0: i32) -> (i32, i32) {
    %c0_i32 = arith.constant 0 : i32
    %c0_i32_0 = arith.constant 0 : i32
    %c0_i32_1 = arith.constant 0 : i32
    return %c0_i32, %c0_i32_0 : i32, i32
  }
  func.func @transform_5(%arg0: i32) -> (i32, i32) {
    %c0_i32 = arith.constant 0 : i32
    %c0_i32_0 = arith.constant 0 : i32
    %c0_i32_1 = arith.constant 0 : i32
    return %c0_i32, %c0_i32_0 : i32, i32
  }
  func.func @transform_6(%arg0: i32) -> (i32, i32) {
    %c0_i32 = arith.constant 0 : i32
    %c0_i32_0 = arith.constant 0 : i32
    %c0_i32_1 = arith.constant 0 : i32
    return %c0_i32, %c0_i32_0 : i32, i32
  }
  func.func @transform_7(%arg0: i32) -> (i32, i32, i32) {
    %c0_i32 = arith.constant 0 : i32
    %c0_i32_0 = arith.constant 0 : i32
    %c0_i32_1 = arith.constant 0 : i32
    return %arg0, %c0_i32, %c0_i32_0 : i32, i32, i32
  }
}

module attributes {stable_mosaic.version = 11 : i64} {
  func.func @kernel(%arg0: i32, %arg1: memref<1x34x128xf32, #tpu.memory_space<vmem>>, %arg2: memref<384x128xbf16, #tpu.memory_space<vmem>>, %arg3: memref<1x128xf32, #tpu.memory_space<vmem>>, %arg4: memref<384x128xbf16, #tpu.memory_space<vmem>>, %arg5: memref<1x128xf32, #tpu.memory_space<vmem>>, %arg6: memref<128x128xbf16, #tpu.memory_space<vmem>>, %arg7: memref<1x128xf32, #tpu.memory_space<vmem>>, %arg8: memref<1x32x128xf32, #tpu.memory_space<vmem>>, %arg9: memref<34x128xf32, #tpu.memory_space<vmem>>) attributes {dimension_semantics = [#tpu.dimension_semantics<parallel>], iteration_bounds = array<i64: 2>, scalar_prefetch = 0 : i64, scratch_operands = 1 : i64, tpu.core_type = #tpu.core_type<tc>, window_params = [{transform_indices = @transform_0, window_bounds = array<i64: 1, 34, 128>}, {pipeline_mode = #tpu.pipeline_mode<synchronous>, transform_indices = @transform_1, window_bounds = array<i64: 384, 128>}, {pipeline_mode = #tpu.pipeline_mode<synchronous>, transform_indices = @transform_2, window_bounds = array<i64: 1, 128>}, {pipeline_mode = #tpu.pipeline_mode<synchronous>, transform_indices = @transform_3, window_bounds = array<i64: 384, 128>}, {pipeline_mode = #tpu.pipeline_mode<synchronous>, transform_indices = @transform_4, window_bounds = array<i64: 1, 128>}, {pipeline_mode = #tpu.pipeline_mode<synchronous>, transform_indices = @transform_5, window_bounds = array<i64: 128, 128>}, {pipeline_mode = #tpu.pipeline_mode<synchronous>, transform_indices = @transform_6, window_bounds = array<i64: 1, 128>}, {transform_indices = @transform_7, window_bounds = array<i64: 1, 32, 128>}]} {
    %c0 = arith.constant 0 : index
    %c0_0 = arith.constant 0 : index
    %c0_1 = arith.constant 0 : index
    %0 = vector.load %arg1[%c0, %c0_0, %c0_1] : memref<1x34x128xf32, #tpu.memory_space<vmem>>, vector<1x34x128xf32>
    %1 = vector.shape_cast %0 : vector<1x34x128xf32> to vector<34x128xf32>
    %cst = arith.constant 0.000000e+00 : f32
    %2 = vector.broadcast %cst : f32 to vector<34x128xf32>
    %3 = arith.maximumf %1, %2 : vector<34x128xf32>
    %4 = arith.truncf %3 : vector<34x128xf32> to vector<34x128xbf16>
    %5 = vector.extract_strided_slice %4 {offsets = [0, 0], sizes = [32, 128], strides = [1, 1]} : vector<34x128xbf16> to vector<32x128xbf16>
    %6 = vector.extract_strided_slice %4 {offsets = [1, 0], sizes = [32, 128], strides = [1, 1]} : vector<34x128xbf16> to vector<32x128xbf16>
    %7 = vector.extract_strided_slice %4 {offsets = [2, 0], sizes = [32, 128], strides = [1, 1]} : vector<34x128xbf16> to vector<32x128xbf16>
    %8 = tpu.concatenate %5, %6, %7 in 1 : vector<32x128xbf16>, vector<32x128xbf16>, vector<32x128xbf16> -> vector<32x384xbf16>
    %c0_2 = arith.constant 0 : index
    %c0_3 = arith.constant 0 : index
    %9 = vector.load %arg2[%c0_2, %c0_3] : memref<384x128xbf16, #tpu.memory_space<vmem>>, vector<384x128xbf16>
    %cst_4 = arith.constant dense<0.000000e+00> : vector<32x128xf32>
    %10 = tpu.matmul %8, %9, %cst_4 {dimension_numbers = #tpu.dot_dimension_numbers<[1], [0], [0], [1], [0, 0, 1, 1], [], []>} : vector<32x384xbf16>, vector<384x128xbf16>, vector<32x128xf32> -> vector<32x128xf32>
    %c0_5 = arith.constant 0 : index
    %c0_6 = arith.constant 0 : index
    %11 = vector.load %arg3[%c0_5, %c0_6] : memref<1x128xf32, #tpu.memory_space<vmem>>, vector<1x128xf32>
    %12 = vector.broadcast %11 : vector<1x128xf32> to vector<32x128xf32>
    %13 = arith.addf %10, %12 : vector<32x128xf32>
    %cst_7 = arith.constant 0.000000e+00 : f32
    %14 = vector.broadcast %cst_7 : f32 to vector<1x128xf32>
    %c0_8 = arith.constant 0 : index
    %c0_9 = arith.constant 0 : index
    %15 = vector.load %arg9[%c0_8, %c0_9] : memref<34x128xf32, #tpu.memory_space<vmem>>, vector<1x128xf32>
    tpu.vector_store %arg9[%c0_8, %c0_9], %14 {strides = array<i32>} : memref<34x128xf32, #tpu.memory_space<vmem>>, vector<1x128xf32>,
    %cst_10 = arith.constant 0.000000e+00 : f32
    %16 = vector.broadcast %cst_10 : f32 to vector<1x128xf32>
    %c33 = arith.constant 33 : index
    %c0_11 = arith.constant 0 : index
    %17 = vector.load %arg9[%c33, %c0_11] : memref<34x128xf32, #tpu.memory_space<vmem>>, vector<1x128xf32>
    tpu.vector_store %arg9[%c33, %c0_11], %16 {strides = array<i32>} : memref<34x128xf32, #tpu.memory_space<vmem>>, vector<1x128xf32>,
    %c1 = arith.constant 1 : index
    %c0_12 = arith.constant 0 : index
    %18 = vector.load %arg9[%c1, %c0_12] : memref<34x128xf32, #tpu.memory_space<vmem>>, vector<32x128xf32>
    tpu.vector_store %arg9[%c1, %c0_12], %13 {strides = array<i32>} : memref<34x128xf32, #tpu.memory_space<vmem>>, vector<32x128xf32>,
    %c0_13 = arith.constant 0 : index
    %c0_14 = arith.constant 0 : index
    %19 = vector.load %arg9[%c0_13, %c0_14] : memref<34x128xf32, #tpu.memory_space<vmem>>, vector<34x128xf32>
    %cst_15 = arith.constant 0.000000e+00 : f32
    %20 = vector.broadcast %cst_15 : f32 to vector<34x128xf32>
    %21 = arith.maximumf %19, %20 : vector<34x128xf32>
    %22 = arith.truncf %21 : vector<34x128xf32> to vector<34x128xbf16>
    %23 = vector.extract_strided_slice %22 {offsets = [0, 0], sizes = [32, 128], strides = [1, 1]} : vector<34x128xbf16> to vector<32x128xbf16>
    %24 = vector.extract_strided_slice %22 {offsets = [1, 0], sizes = [32, 128], strides = [1, 1]} : vector<34x128xbf16> to vector<32x128xbf16>
    %25 = vector.extract_strided_slice %22 {offsets = [2, 0], sizes = [32, 128], strides = [1, 1]} : vector<34x128xbf16> to vector<32x128xbf16>
    %26 = tpu.concatenate %23, %24, %25 in 1 : vector<32x128xbf16>, vector<32x128xbf16>, vector<32x128xbf16> -> vector<32x384xbf16>
    %c0_16 = arith.constant 0 : index
    %c0_17 = arith.constant 0 : index
    %27 = vector.load %arg4[%c0_16, %c0_17] : memref<384x128xbf16, #tpu.memory_space<vmem>>, vector<384x128xbf16>
    %cst_18 = arith.constant dense<0.000000e+00> : vector<32x128xf32>
    %28 = tpu.matmul %26, %27, %cst_18 {dimension_numbers = #tpu.dot_dimension_numbers<[1], [0], [0], [1], [0, 0, 1, 1], [], []>} : vector<32x384xbf16>, vector<384x128xbf16>, vector<32x128xf32> -> vector<32x128xf32>
    %c0_19 = arith.constant 0 : index
    %c0_20 = arith.constant 0 : index
    %29 = vector.load %arg5[%c0_19, %c0_20] : memref<1x128xf32, #tpu.memory_space<vmem>>, vector<1x128xf32>
    %30 = vector.broadcast %29 : vector<1x128xf32> to vector<32x128xf32>
    %31 = arith.addf %28, %30 : vector<32x128xf32>
    %c0_21 = arith.constant 0 : index
    %c1_22 = arith.constant 1 : index
    %c0_23 = arith.constant 0 : index
    %32 = vector.load %arg1[%c0_21, %c1_22, %c0_23] : memref<1x34x128xf32, #tpu.memory_space<vmem>>, vector<1x32x128xf32>
    %33 = vector.shape_cast %32 : vector<1x32x128xf32> to vector<32x128xf32>
    %34 = arith.truncf %33 : vector<32x128xf32> to vector<32x128xbf16>
    %c0_24 = arith.constant 0 : index
    %c0_25 = arith.constant 0 : index
    %35 = vector.load %arg6[%c0_24, %c0_25] : memref<128x128xbf16, #tpu.memory_space<vmem>>, vector<128x128xbf16>
    %cst_26 = arith.constant dense<0.000000e+00> : vector<32x128xf32>
    %36 = tpu.matmul %34, %35, %cst_26 {dimension_numbers = #tpu.dot_dimension_numbers<[1], [0], [0], [1], [0, 0, 1, 1], [], []>} : vector<32x128xbf16>, vector<128x128xbf16>, vector<32x128xf32> -> vector<32x128xf32>
    %c0_27 = arith.constant 0 : index
    %c0_28 = arith.constant 0 : index
    %37 = vector.load %arg7[%c0_27, %c0_28] : memref<1x128xf32, #tpu.memory_space<vmem>>, vector<1x128xf32>
    %38 = vector.broadcast %37 : vector<1x128xf32> to vector<32x128xf32>
    %39 = arith.addf %36, %38 : vector<32x128xf32>
    %40 = arith.addf %31, %39 : vector<32x128xf32>
    %c0_29 = arith.constant 0 : index
    %c0_30 = arith.constant 0 : index
    %c0_31 = arith.constant 0 : index
    %41 = vector.load %arg8[%c0_29, %c0_30, %c0_31] : memref<1x32x128xf32, #tpu.memory_space<vmem>>, vector<1x32x128xf32>
    %42 = vector.shape_cast %41 : vector<1x32x128xf32> to vector<32x128xf32>
    %43 = vector.shape_cast %40 : vector<32x128xf32> to vector<1x32x128xf32>
    tpu.vector_store %arg8[%c0_29, %c0_30, %c0_31], %43 {strides = array<i32>} : memref<1x32x128xf32, #tpu.memory_space<vmem>>, vector<1x32x128xf32>,
    return
  }
  func.func @transform_0(%arg0: i32) -> (i32, i32, i32) {
    %c0_i32 = arith.constant 0 : i32
    %c0_i32_0 = arith.constant 0 : i32
    %c0_i32_1 = arith.constant 0 : i32
    return %arg0, %c0_i32, %c0_i32_0 : i32, i32, i32
  }
  func.func @transform_1(%arg0: i32) -> (i32, i32) {
    %c0_i32 = arith.constant 0 : i32
    %c0_i32_0 = arith.constant 0 : i32
    %c0_i32_1 = arith.constant 0 : i32
    return %c0_i32, %c0_i32_0 : i32, i32
  }
  func.func @transform_2(%arg0: i32) -> (i32, i32) {
    %c0_i32 = arith.constant 0 : i32
    %c0_i32_0 = arith.constant 0 : i32
    %c0_i32_1 = arith.constant 0 : i32
    return %c0_i32, %c0_i32_0 : i32, i32
  }
  func.func @transform_3(%arg0: i32) -> (i32, i32) {
    %c0_i32 = arith.constant 0 : i32
    %c0_i32_0 = arith.constant 0 : i32
    %c0_i32_1 = arith.constant 0 : i32
    return %c0_i32, %c0_i32_0 : i32, i32
  }
  func.func @transform_4(%arg0: i32) -> (i32, i32) {
    %c0_i32 = arith.constant 0 : i32
    %c0_i32_0 = arith.constant 0 : i32
    %c0_i32_1 = arith.constant 0 : i32
    return %c0_i32, %c0_i32_0 : i32, i32
  }
  func.func @transform_5(%arg0: i32) -> (i32, i32) {
    %c0_i32 = arith.constant 0 : i32
    %c0_i32_0 = arith.constant 0 : i32
    %c0_i32_1 = arith.constant 0 : i32
    return %c0_i32, %c0_i32_0 : i32, i32
  }
  func.func @transform_6(%arg0: i32) -> (i32, i32) {
    %c0_i32 = arith.constant 0 : i32
    %c0_i32_0 = arith.constant 0 : i32
    %c0_i32_1 = arith.constant 0 : i32
    return %c0_i32, %c0_i32_0 : i32, i32
  }
  func.func @transform_7(%arg0: i32) -> (i32, i32, i32) {
    %c0_i32 = arith.constant 0 : i32
    %c0_i32_0 = arith.constant 0 : i32
    %c0_i32_1 = arith.constant 0 : i32
    return %arg0, %c0_i32, %c0_i32_0 : i32, i32, i32
  }
}

</mosaic_0001>

<bundles_post_ra>
// kernel: run.3
= control target key start
LH: loop header
LB: loop body
LE: loop exit
PB: predicated region body
PF: predicated region fallthrough
CT: control target
= control target key end

     0   :  { %s1710_s24 = smov 0   ;;  %s1959_s0 = inlined_call_operand.vmem [shape: f32[2,66,128], index: 0, kind: input, shape index: {}]   ;;  %s1960_s1 = inlined_call_operand.vmem [shape: bf16[384,128], index: 1, kind: input, shape index: {}]   ;;  %s1961_s2 = inlined_call_operand.vmem [shape: f32[1,128], index: 2, kind: input, shape index: {}, may-alias: {2,4,6}]   ;;  %s1962_s3 = inlined_call_operand.vmem [shape: bf16[384,128], index: 3, kind: input, shape index: {}]   ;;  %s1963_s4 = inlined_call_operand.vmem [shape: f32[1,128], index: 4, kind: input, shape index: {}, may-alias: {2,4,6}]   ;;  %s1964_s5 = inlined_call_operand.vmem [shape: bf16[128,128], index: 5, kind: input, shape index: {}]   ;;  %s1965_s6 = inlined_call_operand.vmem [shape: f32[1,128], index: 6, kind: input, shape index: {}, may-alias: {2,4,6}]   ;;  %s1966_s7 = inlined_call_operand.vmem [shape: f32[2,32,128], index: 7, kind: output, shape index: {}]  }
   0x1 LB: > { %s1337_s25 = sadd.s32 4294967295, %s1666_s24   ;;  %p1341_p0 = scmp.ge.s32.totalorder %s1666_s24, 1  ;;  %s1666_s24 = sphi %s1710_s24, %s17_s24  }
   0x2   : > { %p237_p1 = scmp.lt.s32.totalorder %s1666_s24, 3 }
   0x4   : > { %p238_p2 = pnand %p1341_p0, %p237_p1 }
   0x5   : > { %v1604_v0 = vld [vmem:[%s1960_s1 + $0x40] sm:$0xff] (!%p238_p2)   ;;  %v1606_v2 = vld [vmem:[%s1960_s1 + $0x48] sm:$0xff] (!%p238_p2)   ;;  %v1609_v5 = vld [vmem:[%s1960_s1 + $0x50] sm:$0xff] (!%p238_p2)   ;;  %p269_p3 = scmp.lt.s32.totalorder (!%p238_p2), %s1337_s25, 1  ;;  %vm340_vm0 = vcmask (!%p238_p2), 1046528  }
   0x6   : > { %241 = sbr.rel (%p238_p2) target bundleno = 545 (0x221), region = 48  ;;  %v1605_v1 = vld [vmem:[%s1960_s1] sm:$0xff] (!%p238_p2)   ;;  %1411 = vmatprep.subr.bf16.mxu0 (!%p238_p2), %v1604_v0  ;;  %v1608_v4 = vld [vmem:[%s1960_s1 + $0x8] sm:$0xff] (!%p238_p2)   ;;  %v1611_v7 = vld [vmem:[%s1960_s1 + $0x10] sm:$0xff] (!%p238_p2)   ;;  %vm294_vm1 = vsmask.f32 (!%p238_p2), 7424 }
   0x7   : > { %1412 = vmatpush3.bf16.msra.mxu0 (!%p238_p2), %v1605_v1  ;;  %v1607_v3 = vld [vmem:[%s1960_s1 + $0x80] sm:$0xff] (!%p238_p2)   ;;  %v1610_v6 = vld [vmem:[%s1960_s1 + $0x88] sm:$0xff] (!%p238_p2)   ;;  %v1612_v8 = vld [vmem:[%s1960_s1 + $0x58] sm:$0xff] (!%p238_p2)  }
   0x8   : > { %1413 = vmatprep.subr.bf16.mxu0 (!%p238_p2), %v1606_v2  ;;  %1525 = vmatprep.subr.bf16.mxu1 (!%p238_p2), %v1607_v3  ;;  %v1613_v9 = vld [vmem:[%s1960_s1 + $0x90] sm:$0xff] (!%p238_p2)   ;;  %v1614_v10 = vld [vmem:[%s1960_s1 + $0x18] sm:$0xff] (!%p238_p2)   ;;  %v1615_v11 = vld [vmem:[%s1960_s1 + $0x60] sm:$0xff] (!%p238_p2)  }
   0x9   : > { %1526 = vmatpush3.bf16.msra.mxu1 (!%p238_p2), %v1607_v3  ;;  %v1616_v12 = vld [vmem:[%s1960_s1 + $0x98] sm:$0xff] (!%p238_p2)   ;;  %v1617_v13 = vld [vmem:[%s1960_s1 + $0x20] sm:$0xff] (!%p238_p2)   ;;  %v1618_v15 = vld [vmem:[%s1960_s1 + $0x68] sm:$0xff] (!%p238_p2)  }
   0xa   : > { %1527 = vmatprep.subr.bf16.mxu1 (!%p238_p2), %v1610_v6  ;;  %v1619_v14 = vld [vmem:[%s1960_s1 + $0xa0] sm:$0xff] (!%p238_p2)   ;;  %v1620_v16 = vld [vmem:[%s1960_s1 + $0x28] sm:$0xff] (!%p238_p2)   ;;  %v1621_v18 = vld [vmem:[%s1960_s1 + $0x70] sm:$0xff] (!%p238_p2)  }
   0xb   : > { %1414 = vmatpush3.bf16.msra.mxu0 (!%p238_p2), %v1608_v4  ;;  %v1622_v17 = vld [vmem:[%s1960_s1 + $0xa8] sm:$0xff] (!%p238_p2)   ;;  %v1623_v19 = vld [vmem:[%s1960_s1 + $0x30] sm:$0xff] (!%p238_p2)   ;;  %v1624_v20 = vld [vmem:[%s1960_s1 + $0x78] sm:$0xff] (!%p238_p2)  }
   0xc   : > { %1415 = vmatprep.subr.bf16.mxu0 (!%p238_p2), %v1609_v5  ;;  %v1625_v21 = vld [vmem:[%s1960_s1 + $0xb0] sm:$0xff] (!%p238_p2)   ;;  %v1626_v30 = vld [vmem:[%s1960_s1 + $0x38] sm:$0xff] (!%p238_p2)   ;;  %v1628_v5 = vld [vmem:[%s1962_s3 + $0x40] sm:$0xff] (!%p238_p2)  }
   0xd   : > { %1528 = vmatpush3.bf16.msra.mxu1 %v1610_v6  ;;  %s1968_s25 = smov (!%p269_p3, %s1337_s25), 1  ;;  %v1627_v38 = vld [vmem:[%s1960_s1 + $0xb8] sm:$0xff]   ;;  %v1629_v6 = vld [vmem:[%s1962_s3] sm:$0xff]  }
   0xe   : > { %1529 = vmatprep.subr.bf16.mxu1 %v1613_v9  ;;  %s1593_s14 = smul.u32 72, %s1968_s25  ;;  %s1410_s22 = sshll.u32 %s1968_s25, 5 }
   0xf   : > { %1416 = vmatpush3.bf16.msra.mxu0 %v1611_v7  ;;  %v1630_v7 = vld [vmem:[%s1962_s3 + $0x48] sm:$0xff]   ;;  %s278_s28 = scalar_lea.vmem %s1966_s7, %s1410_s22 }
  0x10   : > { %1417 = vmatprep.subr.bf16.mxu0 %v1612_v8  ;;  %s1785_s23 = scalar_lea.vmem %s1959_s0, %s1593_s14  ;;  %v1631_v8 = vld [vmem:[%s1962_s3 + $0x8] sm:$0xff]  }
  0x11   : > { %1530 = vmatpush3.bf16.msra.mxu1 %v1613_v9  ;;  %v280_v22 = vld [vmem:[%s1785_s23] sm:$0xff]  ;;  %v281_v23 = vld [vmem:[%s1785_s23 + $0x8] sm:$0xff]  ;;  %v282_v24 = vld [vmem:[%s1785_s23 + $0x10] sm:$0xff] }
  0x12   : > { %1531 = vmatprep.subr.bf16.mxu1 %v1616_v12  ;;  %v283_v25 = vld [vmem:[%s1785_s23 + $0x18] sm:$0xff]  ;;  %v289_v26 = vpack.c.bf16 %v281_v23, %v280_v22  ;;  %v284_v28 = vld [vmem:[%s1785_s23 + $0x20] sm:$0xff]  ;;  %v285_v29 = vld [vmem:[%s1785_s23 + $0x28] sm:$0xff] }
  0x13   : > { %1418 = vmatpush3.bf16.msra.mxu0 %v1614_v10  ;;  %v290_v27 = vpack.c.bf16 %v283_v25, %v282_v24  ;;  %v291_v34 = vpack.c.bf16 %v285_v29, %v284_v28  ;;  %v286_v35 = vld [vmem:[%s1785_s23 + $0x30] sm:$0xff]  ;;  %v287_v36 = vld [vmem:[%s1785_s23 + $0x38] sm:$0xff]  ;;  %v288_v42 = vld [vmem:[%s1785_s23 + $0x40] sm:$0x3]  ;;  %v1668_v10 = vmov 0.0  }
  0x14   : > { %1419 = vmatprep.subr.bf16.mxu0 %v1615_v11  ;;  %v296_v31 = vshrl.u32 %v289_v26, 16  ;;  %v298_v32 = vshll.u32 %v289_v26, 16  ;;  %v341_v33 = vrot.slane %v289_v26, 1  ;;  %v292_v41 = vpack.c.bf16 %v287_v36, %v286_v35  ;;  %v1632_v9 = vld [vmem:[%s1962_s3 + $0x80] sm:$0xff]   ;;  %683 = vst [vmem:[#allocation2] sm:$0x1] %v1668_v10 }
  0x15   : > { %1532 = vmatpush3.bf16.msra.mxu1 %v1616_v12  ;;  %v303_v37 = vshll.u32 %v290_v27, 16  ;;  %v342_v39 = vrot.slane %v290_v27, 1  ;;  %v307_v40 = vshrl.u32 %v290_v27, 16  ;;  %v311_v44 = vshll.u32 %v291_v34, 16  ;;  %684 = vst [vmem:[#allocation2 + $0x41] sm:$0x1] %v1668_v10 }
  0x16   : > { %1533 = vmatprep.subr.bf16.mxu1 %v1619_v14  ;;  %v300_v43 = vrot.slane %v298_v32, 1  ;;  %v344_v47 = vrot.slane %v291_v34, 1  ;;  %v319_v48 = vshll.u32 %v292_v41, 16  ;;  %v315_v51 = vshrl.u32 %v291_v34, 16  ;;  %v1633_v11 = vld [vmem:[%s1962_s3 + $0x50] sm:$0xff]   ;;  %v1644_v22 = vld [vmem:[%s1962_s3 + $0xa0] sm:$0xff]  }
  0x17   : > { %1420 = vmatpush3.bf16.msra.mxu0 %v1617_v13  ;;  %v305_v45 = vrot.slane %v303_v37, 1  ;;  %v343_v46 = vsel %vm340_vm0, %v341_v33, %v342_v39  ;;  %v313_v50 = vrot.slane %v311_v44, 1  ;;  %v293_v52 = vpack.c.bf16 %v288_v42, %v288_v42  ;;  %v1634_v12 = vld [vmem:[%s1962_s3 + $0x10] sm:$0xff]   ;;  %v1635_v13 = vld [vmem:[%s1962_s3 + $0x88] sm:$0xff]   ;;  %v1891_v29 = vld [vmem:[%s1964_s5] sm:$0xff]  }
  0x18   : > { %1421 = vmatprep.subr.bf16.mxu0 %v1618_v15  ;;  %v301_v49 = vor.u32 %v300_v43, %v296_v31  ;;  %1541 = vmatprep.mubr.bf16.mxu1 %v343_v46  ;;  %v321_v54 = vrot.slane %v319_v48, 1  ;;  %v346_v55 = vrot.slane %v292_v41, 1  ;;  %v323_v57 = vshrl.u32 %v292_v41, 16  ;;  %v1637_v15 = vld [vmem:[%s1962_s3 + $0x18] sm:$0xff]   ;;  %v1645_v23 = vld [vmem:[%s1962_s3 + $0x70] sm:$0xff]   ;;  %v1647_v25 = vld [vmem:[%s1962_s3 + $0xa8] sm:$0xff]  }
  0x19   : > { %1534 = vmatpush3.bf16.msra.mxu1 %v1619_v14  ;;  %v309_v53 = vor.u32 %v307_v40, %v305_v45  ;;  %v327_v58 = vshll.u32 %v293_v52, 16  ;;  %v345_v60 = vsel %vm340_vm0, %v342_v39, %v344_v47  ;;  %v348_v61 = vrot.slane %v293_v52, 1  ;;  %v1636_v14 = vld [vmem:[%s1962_s3 + $0x58] sm:$0xff]   ;;  %v1646_v24 = vld [vmem:[%s1962_s3 + $0x30] sm:$0xff]   ;;  %v1900_v33 = vld [vmem:[%s1961_s2] ss:$0 sm:$0xff] }
  0x1a   : > { %1535 = vmatprep.subr.bf16.mxu1 %v1622_v17  ;;  %v306_v56 = vsel %vm294_vm1, %v301_v49, %v305_v45  ;;  %v347_v63 = vsel %vm340_vm0, %v344_v47, %v346_v55  ;;  %v317_v0 = vor.u32 %v315_v51, %v313_v50  ;;  %v325_v3 = vor.u32 %v323_v57, %v321_v54  ;;  %v1650_v28 = vld [vmem:[%s1962_s3 + $0xb0] sm:$0xff]  }
  0x1b   : > { %1422 = vmatpush3.bf16.msra.mxu0 %v1620_v16  ;;  %585 = vmatprep.mubr.bf16.mxu0 %v306_v56  ;;  %v314_v59 = vsel %vm294_vm1, %v309_v53, %v313_v50  ;;  %v329_v62 = vrot.slane %v327_v58, 1  ;;  %v349_v2 = vsel %vm340_vm0, %v346_v55, %v348_v61  ;;  %v1638_v16 = vld [vmem:[%s1962_s3 + $0x90] sm:$0xff]  }
  0x1c   : > { %1423 = vmatprep.subr.bf16.mxu0 %v1621_v18  ;;  %v322_v1 = vsel %vm294_vm1, %v317_v0, %v321_v54  ;;  %v1640_v18 = vld [vmem:[%s1962_s3 + $0x20] sm:$0xff]  }
  0x1d   : > { %1536 = vmatpush3.bf16.msra.mxu1 %v1622_v17  ;;  %v330_v4 = vsel %vm294_vm1, %v325_v3, %v329_v62  ;;  %v1639_v17 = vld [vmem:[%s1962_s3 + $0x60] sm:$0xff]   ;;  %v1669_v62 = vmov -inf  }
  0x1e   : > { %1537 = vmatprep.subr.bf16.mxu1 %v1625_v21 }
  0x1f   : > { %1424 = vmatpush3.bf16.msra.mxu0 %v1623_v19  ;;  %v1641_v19 = vld [vmem:[%s1962_s3 + $0x98] sm:$0xff]  }
  0x20   : > { %1425 = vmatprep.subr.bf16.mxu0 %v1624_v20  ;;  %v1642_v20 = vld [vmem:[%s1962_s3 + $0x68] sm:$0xff]  }
  0x21   : > { %1538 = vmatpush3.bf16.msra.mxu1 %v1625_v21  ;;  %v1643_v21 = vld [vmem:[%s1962_s3 + $0x28] sm:$0xff]  }
  0x22   : > { %1539 = vmatprep.subr.bf16.mxu1 %v1627_v38 }
  0x23   : > { %1426 = vmatpush3.bf16.msra.mxu0 %v1626_v30  ;;  %v1652_v30 = vld [vmem:[%s1962_s3 + $0xb8] sm:$0xff]  }
  0x24   : > { %1463 = vmatprep.subr.bf16.mxu0 %v1628_v5 }
  0x25   : > { %1540 = vmatpush3.bf16.msra.mxu1 %v1627_v38 }
  0x26   : > { %586 = vmatmul.mubr.bf16.vlgmr.msra.gmra.mrb[0].mxu0 %v289_v26  ;;  %1549 = vmatprep.subr.bf16.mxu1 %v1632_v9  ;;  %v1648_v26 = vld [vmem:[%s1962_s3 + $0x78] sm:$0xff]  }
  0x27   : > { %593 = vmatprep.mubr.bf16.mxu0 %v314_v59  ;;  %1464 = vmatpush3.bf16.msra.mxu0 %v1629_v6 }
  0x28   : > { %1542 = vmatmul.mubr.bf16.vlgmr.msra.gmra.mrb[0].mxu1 %v345_v60  ;;  %1465 = vmatprep.subr.bf16.mxu0 %v1630_v7 }
  0x29   : > { %1545 = vmatprep.mubr.bf16.mxu1 %v347_v63  ;;  %1550 = vmatpush3.bf16.msra.mxu1 %v1632_v9 }
  0x2a   : > { %1551 = vmatprep.subr.bf16.mxu1 %v1635_v13 }
  0x2b   : > { %1466 = vmatpush3.bf16.msra.mxu0 %v1631_v8 }
  0x2c   : > { %1467 = vmatprep.subr.bf16.mxu0 %v1633_v11 }
  0x2d   : > { %1552 = vmatpush3.bf16.msra.mxu1 %v1635_v13 }
  0x2e   : > { %594 = vmatmul.mubr.bf16.gmra.mrb[4].mxu0 %v290_v27  ;;  %1553 = vmatprep.subr.bf16.mxu1 %v1638_v16  ;;  %v1649_v27 = vld [vmem:[%s1962_s3 + $0x38] sm:$0xff]  }
  0x2f   : > { %601 = vmatprep.mubr.bf16.mxu0 %v322_v1  ;;  %1468 = vmatpush3.bf16.msra.mxu0 %v1634_v12 }
  0x30   : > { %1546 = vmatmul.mubr.bf16.gmra.mrb[4].mxu1 %v349_v2  ;;  %1469 = vmatprep.subr.bf16.mxu0 %v1636_v14 }
  0x31   : > { %1554 = vmatpush3.bf16.msra.mxu1 %v1638_v16 }
  0x32   : > { %1555 = vmatprep.subr.bf16.mxu1 %v1641_v19 }
  0x33   : > { %1470 = vmatpush3.bf16.msra.mxu0 %v1637_v15 }
  0x34   : > { %1471 = vmatprep.subr.bf16.mxu0 %v1639_v17 }
  0x35   : > { %1556 = vmatpush3.bf16.msra.mxu1 %v1641_v19 }
  0x36   : > { %602 = vmatmul.mubr.bf16.gmra.mrb[8].mxu0 %v291_v34  ;;  %1557 = vmatprep.subr.bf16.mxu1 %v1644_v22 }
  0x37   : > { %609 = vmatprep.mubr.bf16.mxu0 %v330_v4  ;;  %1472 = vmatpush3.bf16.msra.mxu0 %v1640_v18 }
  0x38   : > { %1473 = vmatprep.subr.bf16.mxu0 %v1642_v20 }
  0x39   : > { %1558 = vmatpush3.bf16.msra.mxu1 %v1644_v22 }
  0x3a   : > { %1559 = vmatprep.subr.bf16.mxu1 %v1647_v25 }
  0x3b   : > { %1474 = vmatpush3.bf16.msra.mxu0 %v1643_v21 }
  0x3c   : > { %1475 = vmatprep.subr.bf16.mxu0 %v1645_v23 }
  0x3d   : > { %1560 = vmatpush3.bf16.msra.mxu1 %v1647_v25 }
  0x3e   : > { %610 = vmatmul.mubr.bf16.gmra.mrb[12].mxu0 %v292_v41  ;;  %1561 = vmatprep.subr.bf16.mxu1 %v1650_v28 }
  0x3f   : > { %1476 = vmatpush3.bf16.msra.mxu0 %v1646_v24 }
  0x40   : > { %1477 = vmatprep.subr.bf16.mxu0 %v1648_v26 }
  0x41   : > { %1562 = vmatpush3.bf16.msra.mxu1 %v1650_v28 }
  0x42   : > { %1563 = vmatprep.subr.bf16.mxu1 %v1652_v30 }
  0x43   : > { %1478 = vmatpush3.bf16.msra.mxu0 %v1649_v27 }
  0x44   : > { %1573 = vmatprep.subr.bf16.mxu0 %v1891_v29 }
  0x45   : > { %1564 = vmatpush3.bf16.msra.mxu1 %v1652_v30 }
  0xf9   : > { %v1427_v31 = vpop.f32.mrb[0].mxu0 }
  0xfa   : > { %v1428_v32 = vpop.f32.mrb[1].mxu0 }
  0xfb   : > { %v1429_v34 = vadd.f32 %v1428_v32, %v1427_v31  ;;  %v1430_v35 = vpop.f32.mrb[2].mxu0  ;;  %v1543_v37 = vpop.f32.mrb[0].mxu1 }
  0xfc   : > { %v1431_v36 = vpop.f32.mrb[3].mxu0  ;;  %v652_v40 = vpop.f32.mrb[1].mxu1 }
  0xfd   : > { %v1432_v38 = vadd.f32 %v1431_v36, %v1430_v35  ;;  %v588_v39 = vadd.f32 %v1429_v34, %v1900_v33  ;;  %v1544_v41 = vpop.f32.mrb[2].mxu1 }
  0xfe   : > { %v655_v44 = vpop.f32.mrb[3].mxu1 }
  0xff   : > { %v653_v42 = vadd.f32 %v652_v40, %v588_v39  ;;  %v591_v43 = vadd.f32 %v1432_v38, %v1900_v33 }
 0x101   : > { %685 = vst [vmem:[#allocation2 + $0x1] sm:$0xff] %v653_v42  ;;  %v656_v45 = vadd.f32 %v655_v44, %v591_v43  ;;  %v1433_v46 = vpop.f32.mrb[4].mxu0 }
 0x102   : > { %v1434_v47 = vpop.f32.mrb[5].mxu0 }
 0x103   : > { %686 = vst [vmem:[#allocation2 + $0x9] sm:$0xff] %v656_v45  ;;  %v1435_v48 = vadd.f32 %v1434_v47, %v1433_v46  ;;  %v1436_v49 = vpop.f32.mrb[6].mxu0  ;;  %v1547_v51 = vpop.f32.mrb[4].mxu1  ;;  %v1654_v47 = vld [vmem:[%s1964_s5 + $0x10] sm:$0xff]  }
 0x104   : > { %v1437_v50 = vpop.f32.mrb[7].mxu0  ;;  %v668_v54 = vpop.f32.mrb[5].mxu1 }
 0x105   : > { %v596_v52 = vadd.f32 %v1435_v48, %v1900_v33  ;;  %v1438_v53 = vadd.f32 %v1437_v50, %v1436_v49  ;;  %v1548_v55 = vpop.f32.mrb[6].mxu1 }
 0x106   : > { %v671_v58 = vpop.f32.mrb[7].mxu1 }
 0x107   : > { %v661_v56 = vadd.f32 %v1543_v37, %v596_v52  ;;  %v599_v57 = vadd.f32 %v1438_v53, %v1900_v33 }
 0x108   : > { %v693_v59 = vld [vmem:[#allocation2] sm:$0xff] }
 0x109   : > { %687 = vst [vmem:[#allocation2 + $0x11] sm:$0xff] %v661_v56  ;;  %v664_v60 = vadd.f32 %v1544_v41, %v599_v57  ;;  %v1439_v61 = vpop.f32.mrb[8].mxu0  ;;  %1103 = vst [vmem:[#allocation2] sm:$0x1] %v1669_v62  ;;  %v702_v3 = vmax.f32 %v693_v59, 0.0  ;;  %v1653_v41 = vld [vmem:[%s1964_s5 + $0x8] sm:$0xff]  }
 0x10a   : > { %v1440_v63 = vpop.f32.mrb[9].mxu0  ;;  %v694_v0 = vld [vmem:[#allocation2 + $0x8] sm:$0xff] }
 0x10b   : > { %688 = vst [vmem:[#allocation2 + $0x19] sm:$0xff] %v664_v60  ;;  %v1441_v1 = vadd.f32 %v1440_v63, %v1439_v61  ;;  %v1442_v2 = vpop.f32.mrb[10].mxu0  ;;  %v703_v4 = vmax.f32 %v694_v0, 0.0 }
 0x10c   : > { %v1443_v5 = vpop.f32.mrb[11].mxu0 }
 0x10d   : > { %v604_v6 = vadd.f32 %v1441_v1, %v1900_v33  ;;  %v1444_v7 = vadd.f32 %v1443_v5, %v1442_v2  ;;  %v711_v8 = vpack.c.bf16 %v703_v4, %v702_v3  ;;  %v1656_v1 = vld [vmem:[%s1964_s5 + $0x20] sm:$0xff]  }
 0x10f   : > { %v669_v9 = vadd.f32 %v668_v54, %v604_v6  ;;  %v607_v10 = vadd.f32 %v1444_v7, %v1900_v33  ;;  %v719_v14 = vshll.u32 %v711_v8, 16  ;;  %v761_v26 = vrot.slane %v711_v8, 1 }
 0x110   : > { %v695_v11 = vld [vmem:[#allocation2 + $0x10] sm:$0xff]  ;;  %v717_v27 = vshrl.u32 %v711_v8, 16 }
 0x111   : > { %689 = vst [vmem:[#allocation2 + $0x21] sm:$0xff] %v669_v9  ;;  %v672_v12 = vadd.f32 %v671_v58, %v607_v10  ;;  %v1445_v13 = vpop.f32.mrb[12].mxu0  ;;  %v704_v19 = vmax.f32 %v695_v11, 0.0  ;;  %v721_v25 = vrot.slane %v719_v14, 1  ;;  %v1657_v10 = vld [vmem:[%s1964_s5 + $0x28] sm:$0xff]  }
 0x112   : > { %v1446_v15 = vpop.f32.mrb[13].mxu0  ;;  %v696_v16 = vld [vmem:[#allocation2 + $0x18] sm:$0xff]  ;;  %v1396_v14 = vld [vmem:[%s1785_s23 + $0x11] ss:$2 sm:$0xff] }
 0x113   : > { %690 = vst [vmem:[#allocation2 + $0x29] sm:$0xff] %v672_v12  ;;  %v1447_v17 = vadd.f32 %v1446_v15, %v1445_v13  ;;  %v1448_v18 = vpop.f32.mrb[14].mxu0  ;;  %v705_v20 = vmax.f32 %v696_v16, 0.0  ;;  %v722_v37 = vor.u32 %v721_v25, %v717_v27  ;;  %v1658_v12 = vld [vmem:[%s1964_s5 + $0x30] sm:$0xff]   ;;  %v1395_v13 = vld [vmem:[%s1785_s23 + $0x1] ss:$2 sm:$0xff] }
 0x114   : > { %v1449_v21 = vpop.f32.mrb[15].mxu0  ;;  %v1152_v15 = vpack.c.bf16 %v1396_v14, %v1395_v13  ;;  %v1659_v16 = vld [vmem:[%s1964_s5 + $0x38] sm:$0xff]  }
 0x115   : > { %v612_v22 = vadd.f32 %v1447_v17, %v1900_v33  ;;  %v1450_v23 = vadd.f32 %v1449_v21, %v1448_v18  ;;  %v712_v24 = vpack.c.bf16 %v705_v20, %v704_v19  ;;  %v1397_v17 = vld [vmem:[%s1785_s23 + $0x21] ss:$2 sm:$0xff]  ;;  %v1398_v18 = vld [vmem:[%s1785_s23 + $0x31] ss:$2 sm:$0xff] }
 0x116   : > { %v1153_v19 = vpack.c.bf16 %v1398_v18, %v1397_v17 }
 0x117   : > { %v677_v28 = vadd.f32 %v1547_v51, %v612_v22  ;;  %v615_v30 = vadd.f32 %v1450_v23, %v1900_v33  ;;  %v762_v31 = vrot.slane %v712_v24, 1  ;;  %v724_v32 = vshll.u32 %v712_v24, 16  ;;  %v1370_v22 = vld [vmem:[%s1963_s4] ss:$0 sm:$0xff] }
 0x118   : > { %v697_v34 = vld [vmem:[#allocation2 + $0x20] sm:$0xff]  ;;  %v728_v45 = vshrl.u32 %v712_v24, 16 }
 0x119   : > { %691 = vst [vmem:[#allocation2 + $0x31] sm:$0xff] %v677_v28  ;;  %v680_v35 = vadd.f32 %v1548_v55, %v615_v30  ;;  %v763_v36 = vsel %vm340_vm0, %v761_v26, %v762_v31  ;;  %v726_v38 = vrot.slane %v724_v32, 1  ;;  %v706_v42 = vmax.f32 %v697_v34, 0.0 }
 0x11a   : > { %1565 = vmatprep.mubr.bf16.mxu1 %v763_v36  ;;  %v698_v39 = vld [vmem:[#allocation2 + $0x28] sm:$0xff] }
 0x11b   : > { %692 = vst [vmem:[#allocation2 + $0x39] sm:$0xff] %v680_v35  ;;  %v727_v40 = vsel %vm294_vm1, %v722_v37, %v726_v38  ;;  %v707_v33 = vmax.f32 %v698_v39, 0.0  ;;  %v730_v50 = vor.u32 %v728_v45, %v726_v38 }
 0x11c   : > { %1005 = vmatprep.mubr.bf16.mxu0 %v727_v40 }
 0x11d   : > { %1006 = vmatmul.mubr.bf16.vlgmr.msra.gmra.mrb[16].mxu0 %v711_v8  ;;  %v713_v43 = vpack.c.bf16 %v707_v33, %v706_v42 }
 0x11e   : > { %1574 = vmatpush3.bf16.msra.mxu0 %v1891_v29  ;;  %v1655_v29 = vld [vmem:[%s1964_s5 + $0x18] sm:$0xff]  }
 0x11f   : > { %1575 = vmatprep.subr.bf16.mxu0 %v1653_v41  ;;  %v764_v44 = vrot.slane %v713_v43, 1  ;;  %v732_v46 = vshll.u32 %v713_v43, 16  ;;  %v736_v60 = vshrl.u32 %v713_v43, 16 }
 0x120   : > { %v699_v48 = vld [vmem:[#allocation2 + $0x30] sm:$0xff] }
 0x121   : > { %v765_v49 = vsel %vm340_vm0, %v762_v31, %v764_v44  ;;  %v734_v51 = vrot.slane %v732_v46, 1  ;;  %v708_v55 = vmax.f32 %v699_v48, 0.0 }
 0x122   : > { %1566 = vmatmul.mubr.bf16.vlgmr.msra.gmra.mrb[8].mxu1 %v765_v49  ;;  %1576 = vmatpush3.bf16.msra.mxu0 %v1653_v41  ;;  %v700_v52 = vld [vmem:[#allocation2 + $0x38] sm:$0xff]  ;;  %v701_v53 = vld [vmem:[#allocation2 + $0x40] sm:$0x3] }
 0x123   : > { %v735_v54 = vsel %vm294_vm1, %v730_v50, %v734_v51  ;;  %1577 = vmatprep.subr.bf16.mxu0 %v1654_v47  ;;  %v709_v56 = vmax.f32 %v700_v52, 0.0  ;;  %v710_v57 = vmax.f32 %v701_v53, 0.0  ;;  %1104 = vst [vmem:[#allocation2 + $0x41] sm:$0x1] %v1669_v62  ;;  %v738_v2 = vor.u32 %v736_v60, %v734_v51 }
 0x124   : > { %1013 = vmatprep.mubr.bf16.mxu0 %v735_v54 }
 0x125   : > { %1014 = vmatmul.mubr.bf16.gmra.mrb[20].mxu0 %v712_v24  ;;  %v714_v58 = vpack.c.bf16 %v709_v56, %v708_v55  ;;  %v715_v59 = vpack.c.bf16 %v710_v57, %v710_v57 }
 0x126   : > { %1578 = vmatpush3.bf16.msra.mxu0 %v1654_v47 }
 0x127   : > { %1579 = vmatprep.subr.bf16.mxu0 %v1655_v29  ;;  %v766_v61 = vrot.slane %v714_v58, 1  ;;  %v768_v63 = vrot.slane %v715_v59, 1  ;;  %v740_v0 = vshll.u32 %v714_v58, 16  ;;  %v748_v3 = vshll.u32 %v715_v59, 16 }
 0x128   : > { %v744_v6 = vshrl.u32 %v714_v58, 16 }
 0x129   : > { %v767_v4 = vsel %vm340_vm0, %v764_v44, %v766_v61  ;;  %v769_v62 = vsel %vm340_vm0, %v766_v61, %v768_v63  ;;  %v742_v5 = vrot.slane %v740_v0, 1  ;;  %v750_v9 = vrot.slane %v748_v3, 1 }
 0x12a   : > { %1569 = vmatprep.mubr.bf16.mxu1 %v767_v4  ;;  %1580 = vmatpush3.bf16.msra.mxu0 %v1655_v29 }
 0x12b   : > { %1570 = vmatmul.mubr.bf16.gmra.mrb[12].mxu1 %v769_v62  ;;  %v743_v7 = vsel %vm294_vm1, %v738_v2, %v742_v5  ;;  %1581 = vmatprep.subr.bf16.mxu0 %v1656_v1  ;;  %v746_v8 = vor.u32 %v744_v6, %v742_v5 }
 0x12c   : > { %1021 = vmatprep.mubr.bf16.mxu0 %v743_v7 }
 0x12d   : > { %1022 = vmatmul.mubr.bf16.gmra.mrb[24].mxu0 %v713_v43  ;;  %v751_v11 = vsel %vm294_vm1, %v746_v8, %v750_v9 }
 0x12e   : > { %1029 = vmatprep.mubr.bf16.mxu0 %v751_v11  ;;  %1582 = vmatpush3.bf16.msra.mxu0 %v1656_v1  ;;  %v1399_v11 = vld [vmem:[%s1965_s6] ss:$0 sm:$0xff] }
 0x12f   : > { %1583 = vmatprep.subr.bf16.mxu0 %v1657_v10 }
 0x132   : > { %1584 = vmatpush3.bf16.msra.mxu0 %v1657_v10 }
 0x133   : > { %1585 = vmatprep.subr.bf16.mxu0 %v1658_v12 }
 0x135   : > { %1030 = vmatmul.mubr.bf16.gmra.mrb[28].mxu0 %v714_v58 }
 0x136   : > { %1586 = vmatpush3.bf16.msra.mxu0 %v1658_v12  ;;  %1589 = vmatprep.mubr.bf16.mxu0 %v1152_v15 }
 0x137   : > { %1587 = vmatprep.subr.bf16.mxu0 %v1659_v16 }
 0x13a   : > { %1588 = vmatpush3.bf16.msra.mxu0 %v1659_v16 }
 0x13d   : > { %1590 = vmatmul.mubr.bf16.vlgmr.msra.gmra.mrb[32].mxu0 %v1153_v19 }
 0x1f0   : > { %v1479_v20 = vpop.f32.mrb[16].mxu0 }
 0x1f1   : > { %v1480_v21 = vpop.f32.mrb[17].mxu0 }
 0x1f2   : > { %v1481_v23 = vadd.f32 %v1480_v21, %v1479_v20  ;;  %v1482_v24 = vpop.f32.mrb[18].mxu0 }
 0x1f3   : > { %v1483_v25 = vpop.f32.mrb[19].mxu0 }
 0x1f4   : > { %v1484_v26 = vadd.f32 %v1483_v25, %v1482_v24  ;;  %v1008_v27 = vadd.f32 %v1481_v23, %v1370_v22 }
 0x1f5   : > { %v1567_v28 = vpop.f32.mrb[8].mxu1 }
 0x1f6   : > { %v1072_v30 = vpop.f32.mrb[9].mxu1  ;;  %v1011_v31 = vadd.f32 %v1484_v26, %v1370_v22 }
 0x1f7   : > { %v1073_v32 = vadd.f32 %v1072_v30, %v1008_v27  ;;  %v1568_v34 = vpop.f32.mrb[10].mxu1 }
 0x1f8   : > { %v1485_v35 = vpop.f32.mrb[20].mxu0  ;;  %v1075_v36 = vpop.f32.mrb[11].mxu1 }
 0x1f9   : > { %1105 = vst [vmem:[#allocation2 + $0x1] sm:$0xff] %v1073_v32  ;;  %v1076_v37 = vadd.f32 %v1075_v36, %v1011_v31  ;;  %v1486_v38 = vpop.f32.mrb[21].mxu0 }
 0x1fa   : > { %v1487_v39 = vadd.f32 %v1486_v38, %v1485_v35  ;;  %v1488_v40 = vpop.f32.mrb[22].mxu0 }
 0x1fb   : > { %1106 = vst [vmem:[#allocation2 + $0x9] sm:$0xff] %v1076_v37  ;;  %v1489_v41 = vpop.f32.mrb[23].mxu0 }
 0x1fc   : > { %v1016_v42 = vadd.f32 %v1487_v39, %v1370_v22  ;;  %v1490_v33 = vadd.f32 %v1489_v41, %v1488_v40 }
 0x1fe   : > { %v1081_v43 = vadd.f32 %v1567_v28, %v1016_v42  ;;  %v1019_v44 = vadd.f32 %v1490_v33, %v1370_v22  ;;  %v1571_v45 = vpop.f32.mrb[12].mxu1 }
 0x1ff   : > { %v1088_v46 = vpop.f32.mrb[13].mxu1 }
 0x200   : > { %1107 = vst [vmem:[#allocation2 + $0x11] sm:$0xff] %v1081_v43  ;;  %v1084_v47 = vadd.f32 %v1568_v34, %v1019_v44  ;;  %v1491_v48 = vpop.f32.mrb[24].mxu0  ;;  %v1572_v49 = vpop.f32.mrb[14].mxu1 }
 0x201   : > { %v1492_v50 = vpop.f32.mrb[25].mxu0  ;;  %v1091_v51 = vpop.f32.mrb[15].mxu1 }
 0x202   : > { %1108 = vst [vmem:[#allocation2 + $0x19] sm:$0xff] %v1084_v47  ;;  %v1493_v52 = vadd.f32 %v1492_v50, %v1491_v48  ;;  %v1494_v53 = vpop.f32.mrb[26].mxu0  ;;  %v1113_v3 = vld [vmem:[#allocation2] ss:$2 sm:$0xff]  ;;  %v1121_v4 = vld [vmem:[#allocation2 + $0x1] ss:$2 sm:$0xff] }
 0x203   : > { %v1495_v54 = vpop.f32.mrb[27].mxu0  ;;  %v1136_v8 = vmax.f32 %v1113_v3, %v1121_v4  ;;  %v1129_v17 = vld [vmem:[#allocation2 + $0x2] ss:$2 sm:$0xff] }
 0x204   : > { %v1024_v29 = vadd.f32 %v1493_v52, %v1370_v22  ;;  %v1496_v55 = vadd.f32 %v1495_v54, %v1494_v53 }
 0x205   : > { %v1140_v20 = vmax.f32 %v1136_v8, %v1129_v17 }
 0x206   : > { %v1089_v56 = vadd.f32 %v1088_v46, %v1024_v29  ;;  %v1027_v57 = vadd.f32 %v1496_v55, %v1370_v22 }
 0x208   : > { %1109 = vst [vmem:[#allocation2 + $0x21] sm:$0xff] %v1089_v56  ;;  %v1092_v58 = vadd.f32 %v1091_v51, %v1027_v57  ;;  %v1497_v59 = vpop.f32.mrb[28].mxu0 }
 0x209   : > { %v1498_v60 = vpop.f32.mrb[29].mxu0  ;;  %v1115_v6 = vld [vmem:[#allocation2 + $0x10] ss:$2 sm:$0xff]  ;;  %v1123_v7 = vld [vmem:[#allocation2 + $0x11] ss:$2 sm:$0xff] }
 0x20a   : > { %1110 = vst [vmem:[#allocation2 + $0x29] sm:$0xff] %v1092_v58  ;;  %v1499_v61 = vadd.f32 %v1498_v60, %v1497_v59  ;;  %v1500_v63 = vpop.f32.mrb[30].mxu0  ;;  %v1137_v14 = vmax.f32 %v1115_v6, %v1123_v7  ;;  %v1131_v24 = vld [vmem:[#allocation2 + $0x12] ss:$2 sm:$0xff] }
 0x20b   : > { %v1501_v0 = vpop.f32.mrb[31].mxu0 }
 0x20c   : > { %v1032_v1 = vadd.f32 %v1499_v61, %v1370_v22  ;;  %v1502_v2 = vadd.f32 %v1501_v0, %v1500_v63  ;;  %v1141_v27 = vmax.f32 %v1137_v14, %v1131_v24 }
 0x20e   : > { %v1097_v62 = vadd.f32 %v1571_v45, %v1032_v1  ;;  %v1035_v5 = vadd.f32 %v1502_v2, %v1370_v22 }
 0x210   : > { %1111 = vst [vmem:[#allocation2 + $0x31] sm:$0xff] %v1097_v62  ;;  %v1100_v9 = vadd.f32 %v1572_v49, %v1035_v5  ;;  %v1591_v10 = vpop.f32.mrb[32].mxu0 }
 0x211   : > { %v1117_v12 = vld [vmem:[#allocation2 + $0x20] ss:$2 sm:$0xff]  ;;  %v1125_v13 = vld [vmem:[#allocation2 + $0x21] ss:$2 sm:$0xff]  ;;  %v1268_v16 = vadd.f32 %v1591_v10, %v1399_v11  ;;  %v1259_v18 = vpop.f32.mrb[33].mxu0 }
 0x212   : > { %1112 = vst [vmem:[#allocation2 + $0x39] sm:$0xff] %v1100_v9  ;;  %v1138_v15 = vmax.f32 %v1117_v12, %v1125_v13  ;;  %v1133_v19 = vld [vmem:[#allocation2 + $0x22] ss:$2 sm:$0xff]  ;;  %v1260_v21 = vadd.f32 %v1399_v11, %v1259_v18  ;;  %v1592_v22 = vpop.f32.mrb[34].mxu0 }
 0x213   : > { %v1262_v25 = vpop.f32.mrb[35].mxu0  ;;  %v1271_v38 = vadd.f32 %v1592_v22, %v1399_v11 }
 0x214   : > { %v1142_v23 = vmax.f32 %v1138_v15, %v1133_v19  ;;  %v1274_v26 = vadd.f32 %v1260_v21, %v1140_v20  ;;  %v1263_v28 = vadd.f32 %v1399_v11, %v1262_v25 }
 0x216   : > { %v1276_v30 = vadd.f32 %v1268_v16, %v1142_v23  ;;  %1278 = vst [vmem:[%s278_s28] sm:$0xff] %v1274_v26  ;;  %v1275_v31 = vadd.f32 %v1263_v28, %v1141_v27 }
 0x218   : > { %1280 = vst [vmem:[%s278_s28 + $0x10] sm:$0xff] %v1276_v30  ;;  %1279 = vst [vmem:[%s278_s28 + $0x8] sm:$0xff] %v1275_v31 }
 0x219   : > { %v1119_v32 = vld [vmem:[#allocation2 + $0x30] ss:$2 sm:$0xff]  ;;  %v1127_v34 = vld [vmem:[#allocation2 + $0x31] ss:$2 sm:$0xff] }
 0x21a   : > { %v1139_v35 = vmax.f32 %v1119_v32, %v1127_v34  ;;  %v1135_v36 = vld [vmem:[#allocation2 + $0x32] ss:$2 sm:$0xff] }
 0x21c   : > { %v1143_v37 = vmax.f32 %v1139_v35, %v1135_v36 }
 0x21e   : > { %v1277_v39 = vadd.f32 %v1271_v38, %v1143_v37 }
 0x220   : > { %1281 = vst [vmem:[%s278_s28 + $0x18] sm:$0xff] %v1277_v39 }
 0x221 PF: > { %s17_s24 = sadd.s32 1, %s1666_s24  }
 0x222   : > { %p14_p4 = scmp.ge.s32.totalorder %s17_s24, 4  }
 0x224   :  { %16 = sbr.rel (!%p14_p4) target bundleno = 1 (0x1), region = 93 }

// kernel: run.5
= control target key start
LH: loop header
LB: loop body
LE: loop exit
PB: predicated region body
PF: predicated region fallthrough
CT: control target
= control target key end

     0   :  { %12 = vsyncpa [#allocation4], 0  ;;  %s1919_s0 = inlined_call_operand.vmem [shape: f32[2,34,128], index: 0, kind: input, shape index: {}]   ;;  %s1920_s1 = inlined_call_operand.vmem [shape: bf16[384,128], index: 1, kind: input, shape index: {}]   ;;  %s1921_s2 = inlined_call_operand.vmem [shape: f32[1,128], index: 2, kind: input, shape index: {}, may-alias: {2,4,6}]   ;;  %s1922_s3 = inlined_call_operand.vmem [shape: bf16[384,128], index: 3, kind: input, shape index: {}]   ;;  %s1923_s4 = inlined_call_operand.vmem [shape: f32[1,128], index: 4, kind: input, shape index: {}, may-alias: {2,4,6}]   ;;  %s1924_s5 = inlined_call_operand.vmem [shape: bf16[128,128], index: 5, kind: input, shape index: {}]   ;;  %s1925_s6 = inlined_call_operand.vmem [shape: f32[1,128], index: 6, kind: input, shape index: {}, may-alias: {2,4,6}]   ;;  %s1926_s7 = inlined_call_operand.hbm [shape: f32[2,32,128], index: 7, kind: output, shape index: {}]  }
   0x1   :  { %14 = vsyncpa [#allocation4 + $0x1], 0  ;;  %s1616_s24 = smov 0   ;;  %s1618_s25 = smov 0  }
   0x2   :  { %s1620_s26 = smov 0   ;;  %s1622_s27 = smov 0  }
   0x3 LB: > { %s1637_s28 = sadd.s32 4294967295, %s1570_s27   ;;  %s1180_s29 = sadd.s32 4294967294, %s1570_s27   ;;  %s1570_s27 = sphi %s1622_s27, %s1932_s27   ;;  %s1566_s26 = sphi %s1620_s26, %s1931_s26   ;;  %s1562_s25 = sphi %s1618_s25, %s1930_s25   ;;  %s1558_s24 = sphi %s1616_s24, %s1929_s24  }
   0x4   : > { %s1641_s30 = sadd.s32 1, %s1570_s27   ;;  %s179_s8 = sadd.s32 1, %s1566_s26 }
   0x5   : > { %s176_s9 = ssub.s32 %s1570_s27, %s1641_s30  ;;  %p189_p0 = scmp.ne.s32.totalorder %s1566_s26, %s1562_s25 }
   0x6   : > { %p177_p1 = scmp.eq.s32.totalorder %s176_s9, 0  ;;  %p190_p2 = scmp.eq.s32.totalorder %s1637_s28, 1 }
   0x7   : > { %p195_p3 = scmp.ne.s32.totalorder %s1562_s25, %s1558_s24  ;;  %p196_p4 = scmp.eq.s32.totalorder %s1180_s29, 1 }
   0x8   : > { %s1652_s10 = scalar_select %p177_p1, %s1566_s26, %s179_s8  }
   0x9   : > { %p1654_p5 = por %p190_p2, %p189_p0  ;;  %p1658_p6 = por %p196_p4, %p195_p3 }
   0xa   : > { %p1183_p7 = scmp.ge.s32.totalorder %s1570_s27, 1  ;;  %p240_p8 = scmp.lt.s32.totalorder %s1570_s27, 3 }
   0xc   : > { %p241_p9 = pnand %p1183_p7, %p240_p8 }
   0xd   : > { %v1452_v0 = vld [vmem:[%s1920_s1 + $0x40] sm:$0xff] (!%p241_p9)   ;;  %v1454_v2 = vld [vmem:[%s1920_s1 + $0x48] sm:$0xff] (!%p241_p9)   ;;  %v1457_v5 = vld [vmem:[%s1920_s1 + $0x50] sm:$0xff] (!%p241_p9)   ;;  %p272_p10 = scmp.lt.s32.totalorder (!%p241_p9), %s1637_s28, 1  ;;  %vm291_vm0 = vsmask.f32 (!%p241_p9), 7424 }
   0xe   : > { %244 = sbr.rel (%p241_p9) target bundleno = 555 (0x22b), region = 48  ;;  %v1453_v1 = vld [vmem:[%s1920_s1] sm:$0xff] (!%p241_p9)   ;;  %1251 = vmatprep.subr.bf16.mxu0 (!%p241_p9), %v1452_v0  ;;  %v1456_v4 = vld [vmem:[%s1920_s1 + $0x8] sm:$0xff] (!%p241_p9)   ;;  %v1459_v7 = vld [vmem:[%s1920_s1 + $0x10] sm:$0xff] (!%p241_p9)   ;;  %vm317_vm1 = vcmask (!%p241_p9), 1046528   ;;  %v1572_v61 = vmov (!%p241_p9), 0.0  }
   0xf   : > { %1252 = vmatpush3.bf16.msra.mxu0 (!%p241_p9), %v1453_v1  ;;  %v1455_v3 = vld [vmem:[%s1920_s1 + $0x80] sm:$0xff] (!%p241_p9)   ;;  %v1458_v6 = vld [vmem:[%s1920_s1 + $0x88] sm:$0xff] (!%p241_p9)   ;;  %v1460_v8 = vld [vmem:[%s1920_s1 + $0x58] sm:$0xff] (!%p241_p9)   ;;  %622 = vst [vmem:[#allocation2] sm:$0x1] (!%p241_p9), %v1572_v61  ;;  %s269_s9 = sand.u32 (!%p241_p9), 1, %s1562_s25  }
  0x10   : > { %1253 = vmatprep.subr.bf16.mxu0 (!%p241_p9), %v1454_v2  ;;  %1337 = vmatprep.subr.bf16.mxu1 (!%p241_p9), %v1455_v3  ;;  %v1461_v9 = vld [vmem:[%s1920_s1 + $0x90] sm:$0xff] (!%p241_p9)   ;;  %v1462_v10 = vld [vmem:[%s1920_s1 + $0x18] sm:$0xff] (!%p241_p9)   ;;  %v1463_v11 = vld [vmem:[%s1920_s1 + $0x60] sm:$0xff] (!%p241_p9)   ;;  %623 = vst [vmem:[#allocation2 + $0x21] sm:$0x1] (!%p241_p9), %v1572_v61  ;;  %s1250_s20 = sshll.u32 (!%p241_p9), %s1637_s28, 9 }
  0x11   : > { %1338 = vmatpush3.bf16.msra.mxu1 (!%p241_p9), %v1455_v3  ;;  %v1464_v12 = vld [vmem:[%s1920_s1 + $0x98] sm:$0xff] (!%p241_p9)   ;;  %v1465_v13 = vld [vmem:[%s1920_s1 + $0x20] sm:$0xff] (!%p241_p9)   ;;  %v1466_v15 = vld [vmem:[%s1920_s1 + $0x68] sm:$0xff] (!%p241_p9)   ;;  %s1876_s22 = scalar_lea.hbm (!%p241_p9), %s1926_s7, %s1250_s20  ;;  %s1573_s29 = smov (!%p241_p9), [#allocation3]  }
  0x12   : > { %1339 = vmatprep.subr.bf16.mxu1 (!%p241_p9), %v1458_v6  ;;  %v1467_v14 = vld [vmem:[%s1920_s1 + $0xa0] sm:$0xff] (!%p241_p9)   ;;  %v1468_v16 = vld [vmem:[%s1920_s1 + $0x28] sm:$0xff] (!%p241_p9)   ;;  %v1469_v18 = vld [vmem:[%s1920_s1 + $0x70] sm:$0xff] (!%p241_p9)  }
  0x13   : > { %1254 = vmatpush3.bf16.msra.mxu0 (!%p241_p9), %v1456_v4  ;;  %v1470_v17 = vld [vmem:[%s1920_s1 + $0xa8] sm:$0xff] (!%p241_p9)   ;;  %v1471_v19 = vld [vmem:[%s1920_s1 + $0x30] sm:$0xff] (!%p241_p9)   ;;  %v1472_v20 = vld [vmem:[%s1920_s1 + $0x78] sm:$0xff] (!%p241_p9)  }
  0x14   : > { %1255 = vmatprep.subr.bf16.mxu0 (!%p241_p9), %v1457_v5  ;;  %v1473_v21 = vld [vmem:[%s1920_s1 + $0xb0] sm:$0xff] (!%p241_p9)   ;;  %v1474_v29 = vld [vmem:[%s1920_s1 + $0x38] sm:$0xff] (!%p241_p9)   ;;  %v1476_v54 = vld [vmem:[%s1922_s3 + $0x80] sm:$0xff] (!%p241_p9)  }
  0x15   : > { %1340 = vmatpush3.bf16.msra.mxu1 %v1458_v6  ;;  %s273_s8 = scalar_select %p272_p10, %s1637_s28, 1  ;;  %v1475_v33 = vld [vmem:[%s1920_s1 + $0xb8] sm:$0xff]   ;;  %v1477_v55 = vld [vmem:[%s1922_s3 + $0x40] sm:$0xff]   ;;  %v1479_v57 = vld [vmem:[%s1922_s3 + $0x88] sm:$0xff]  }
  0x16   : > { %1341 = vmatprep.subr.bf16.mxu1 %v1461_v9  ;;  %v1478_v56 = vld [vmem:[%s1922_s3] sm:$0xff]   ;;  %v1480_v58 = vld [vmem:[%s1922_s3 + $0x48] sm:$0xff]   ;;  %v1482_v60 = vld [vmem:[%s1922_s3 + $0x90] sm:$0xff]   ;;  %s1878_s28 = scalar_lea.sflag [#allocation4], %s269_s9 }
  0x17   : > { %1256 = vmatpush3.bf16.msra.mxu0 %v1459_v7  ;;  %s1409_s18 = smul.u32 40, %s273_s8  ;;  %v1481_v59 = vld [vmem:[%s1922_s3 + $0x8] sm:$0xff]   ;;  %v1483_v62 = vld [vmem:[%s1922_s3 + $0x50] sm:$0xff]   ;;  %v1485_v0 = vld [vmem:[%s1922_s3 + $0x98] sm:$0xff]  }
  0x18   : > { %1257 = vmatprep.subr.bf16.mxu0 %v1460_v8  ;;  %v1484_v63 = vld [vmem:[%s1922_s3 + $0x10] sm:$0xff]   ;;  %v1486_v1 = vld [vmem:[%s1922_s3 + $0x58] sm:$0xff]   ;;  %v1488_v3 = vld [vmem:[%s1922_s3 + $0xa0] sm:$0xff]  }
  0x19   : > { %1342 = vmatpush3.bf16.msra.mxu1 %v1461_v9  ;;  %s1726_s8 = scalar_lea.vmem %s1919_s0, %s1409_s18  ;;  %v1487_v2 = vld [vmem:[%s1922_s3 + $0x18] sm:$0xff]   ;;  %v1489_v4 = vld [vmem:[%s1922_s3 + $0x60] sm:$0xff]   ;;  %v1491_v6 = vld [vmem:[%s1922_s3 + $0xa8] sm:$0xff]  }
  0x1a   : > { %1343 = vmatprep.subr.bf16.mxu1 %v1464_v12  ;;  %v278_v22 = vld [vmem:[%s1726_s8] sm:$0xff]  ;;  %v279_v23 = vld [vmem:[%s1726_s8 + $0x8] sm:$0xff]  ;;  %v280_v24 = vld [vmem:[%s1726_s8 + $0x10] sm:$0xff] }
  0x1b   : > { %1258 = vmatpush3.bf16.msra.mxu0 %v1462_v10  ;;  %v281_v25 = vld [vmem:[%s1726_s8 + $0x18] sm:$0xff]  ;;  %v283_v26 = vmax.f32 %v278_v22, 0.0  ;;  %v284_v27 = vmax.f32 %v279_v23, 0.0  ;;  %v285_v28 = vmax.f32 %v280_v24, 0.0  ;;  %v282_v31 = vld [vmem:[%s1726_s8 + $0x20] sm:$0x3] }
  0x1c   : > { %1259 = vmatprep.subr.bf16.mxu0 %v1463_v11  ;;  %v286_v30 = vmax.f32 %v281_v25, 0.0  ;;  %v287_v34 = vmax.f32 %v282_v31, 0.0  ;;  %v1490_v5 = vld [vmem:[%s1922_s3 + $0x20] sm:$0xff]   ;;  %v1492_v7 = vld [vmem:[%s1922_s3 + $0x68] sm:$0xff]   ;;  %v1494_v8 = vld [vmem:[%s1922_s3 + $0xb0] sm:$0xff]  }
  0x1d   : > { %1344 = vmatpush3.bf16.msra.mxu1 %v1464_v12  ;;  %v288_v32 = vpack.c.bf16 %v284_v27, %v283_v26  ;;  %v1493_v9 = vld [vmem:[%s1922_s3 + $0x28] sm:$0xff]   ;;  %v1495_v10 = vld [vmem:[%s1922_s3 + $0x70] sm:$0xff]   ;;  %v1497_v11 = vld [vmem:[%s1922_s3 + $0xb8] sm:$0xff]  }
  0x1e   : > { %1345 = vmatprep.subr.bf16.mxu1 %v1467_v14  ;;  %v289_v35 = vpack.c.bf16 %v286_v30, %v285_v28  ;;  %v290_v39 = vpack.c.bf16 %v287_v34, %v287_v34  ;;  %v1496_v12 = vld [vmem:[%s1922_s3 + $0x30] sm:$0xff]   ;;  %v970_v61 = vld [vmem:[%s1726_s8 + $0x1] sm:$0xff] }
  0x1f   : > { %1260 = vmatpush3.bf16.msra.mxu0 %v1465_v13  ;;  %v293_v36 = vshrl.u32 %v288_v32, 16  ;;  %v295_v37 = vshll.u32 %v288_v32, 16  ;;  %v318_v38 = vrot.slane %v288_v32, 1  ;;  %v1498_v13 = vld [vmem:[%s1922_s3 + $0x78] sm:$0xff]  }
  0x20   : > { %1261 = vmatprep.subr.bf16.mxu0 %v1466_v15  ;;  %v300_v40 = vshll.u32 %v289_v35, 16  ;;  %v319_v41 = vrot.slane %v289_v35, 1  ;;  %v304_v42 = vshrl.u32 %v289_v35, 16  ;;  %v321_v44 = vrot.slane %v290_v39, 1  ;;  %v1827_v15 = vld [vmem:[%s1924_s5] sm:$0xff]  }
  0x21   : > { %1346 = vmatpush3.bf16.msra.mxu1 %v1467_v14  ;;  %v297_v43 = vrot.slane %v295_v37, 1  ;;  %v308_v45 = vshll.u32 %v290_v39, 16  ;;  %v1499_v14 = vld [vmem:[%s1922_s3 + $0x38] sm:$0xff]  }
  0x22   : > { %1347 = vmatprep.subr.bf16.mxu1 %v1470_v17  ;;  %v302_v46 = vrot.slane %v300_v40, 1  ;;  %v320_v47 = vsel %vm317_vm1, %v318_v38, %v319_v41  ;;  %v322_v52 = vsel %vm317_vm1, %v319_v41, %v321_v44 }
  0x23   : > { %1262 = vmatpush3.bf16.msra.mxu0 %v1468_v16  ;;  %v298_v48 = vor.u32 %v297_v43, %v293_v36  ;;  %1353 = vmatprep.mubr.bf16.mxu1 %v320_v47  ;;  %v310_v49 = vrot.slane %v308_v45, 1 }
  0x24   : > { %1263 = vmatprep.subr.bf16.mxu0 %v1469_v18  ;;  %v306_v50 = vor.u32 %v304_v42, %v302_v46 }
  0x25   : > { %1348 = vmatpush3.bf16.msra.mxu1 %v1470_v17  ;;  %v303_v51 = vsel %vm291_vm0, %v298_v48, %v302_v46 }
  0x26   : > { %1349 = vmatprep.subr.bf16.mxu1 %v1473_v21  ;;  %556 = vmatprep.mubr.bf16.mxu0 %v303_v51  ;;  %v311_v53 = vsel %vm291_vm0, %v306_v50, %v310_v49 }
  0x27   : > { %1264 = vmatpush3.bf16.msra.mxu0 %v1471_v19  ;;  %v1186_v19 = vld [vmem:[%s1921_s2] ss:$0 sm:$0xff] }
  0x28   : > { %1265 = vmatprep.subr.bf16.mxu0 %v1472_v20 }
  0x29   : > { %1350 = vmatpush3.bf16.msra.mxu1 %v1473_v21 }
  0x2a   : > { %1351 = vmatprep.subr.bf16.mxu1 %v1475_v33 }
  0x2b   : > { %1266 = vmatpush3.bf16.msra.mxu0 %v1474_v29 }
  0x2c   : > { %1289 = vmatprep.subr.bf16.mxu0 %v1477_v55 }
  0x2d   : > { %1352 = vmatpush3.bf16.msra.mxu1 %v1475_v33 }
  0x2e   : > { %557 = vmatmul.mubr.bf16.vlgmr.msra.gmra.mrb[0].mxu0 %v288_v32  ;;  %1357 = vmatprep.subr.bf16.mxu1 %v1476_v54 }
  0x2f   : > { %564 = vmatprep.mubr.bf16.mxu0 %v311_v53  ;;  %1290 = vmatpush3.bf16.msra.mxu0 %v1478_v56 }
  0x30   : > { %1354 = vmatmul.mubr.bf16.vlgmr.msra.gmra.mrb[0].mxu1 %v322_v52  ;;  %1291 = vmatprep.subr.bf16.mxu0 %v1480_v58 }
  0x31   : > { %1358 = vmatpush3.bf16.msra.mxu1 %v1476_v54 }
  0x32   : > { %1359 = vmatprep.subr.bf16.mxu1 %v1479_v57 }
  0x33   : > { %1292 = vmatpush3.bf16.msra.mxu0 %v1481_v59 }
  0x34   : > { %1293 = vmatprep.subr.bf16.mxu0 %v1483_v62  ;;  %v971_v62 = vld [vmem:[%s1726_s8 + $0x9] sm:$0xff] }
  0x35   : > { %1360 = vmatpush3.bf16.msra.mxu1 %v1479_v57 }
  0x36   : > { %565 = vmatmul.mubr.bf16.gmra.mrb[4].mxu0 %v289_v35  ;;  %1361 = vmatprep.subr.bf16.mxu1 %v1482_v60 }
  0x37   : > { %1294 = vmatpush3.bf16.msra.mxu0 %v1484_v63 }
  0x38   : > { %1295 = vmatprep.subr.bf16.mxu0 %v1486_v1 }
  0x39   : > { %1362 = vmatpush3.bf16.msra.mxu1 %v1482_v60 }
  0x3a   : > { %1363 = vmatprep.subr.bf16.mxu1 %v1485_v0 }
  0x3b   : > { %1296 = vmatpush3.bf16.msra.mxu0 %v1487_v2 }
  0x3c   : > { %1297 = vmatprep.subr.bf16.mxu0 %v1489_v4 }
  0x3d   : > { %1364 = vmatpush3.bf16.msra.mxu1 %v1485_v0 }
  0x3e   : > { %1365 = vmatprep.subr.bf16.mxu1 %v1488_v3 }
  0x3f   : > { %1298 = vmatpush3.bf16.msra.mxu0 %v1490_v5  ;;  %v1501_v5 = vld [vmem:[%s1924_s5 + $0x8] sm:$0xff]  }
  0x40   : > { %1299 = vmatprep.subr.bf16.mxu0 %v1492_v7 }
  0x41   : > { %1366 = vmatpush3.bf16.msra.mxu1 %v1488_v3 }
  0x42   : > { %1367 = vmatprep.subr.bf16.mxu1 %v1491_v6 }
  0x43   : > { %1300 = vmatpush3.bf16.msra.mxu0 %v1493_v9 }
  0x44   : > { %1301 = vmatprep.subr.bf16.mxu0 %v1495_v10 }
  0x45   : > { %1368 = vmatpush3.bf16.msra.mxu1 %v1491_v6  ;;  %v974_v6 = vpack.c.bf16 %v971_v62, %v970_v61 }
  0x46   : > { %1369 = vmatprep.subr.bf16.mxu1 %v1494_v8 }
  0x47   : > { %1302 = vmatpush3.bf16.msra.mxu0 %v1496_v12  ;;  %v1503_v12 = vld [vmem:[%s1924_s5 + $0x18] sm:$0xff]  }
  0x48   : > { %1303 = vmatprep.subr.bf16.mxu0 %v1498_v13  ;;  %v1504_v13 = vld [vmem:[%s1924_s5 + $0x20] sm:$0xff]  }
  0x49   : > { %1370 = vmatpush3.bf16.msra.mxu1 %v1494_v8 }
  0x4a   : > { %1371 = vmatprep.subr.bf16.mxu1 %v1497_v11 }
  0x4b   : > { %1304 = vmatpush3.bf16.msra.mxu0 %v1499_v14  ;;  %v1505_v14 = vld [vmem:[%s1924_s5 + $0x28] sm:$0xff]  }
  0x4d   : > { %1372 = vmatpush3.bf16.msra.mxu1 %v1497_v11  ;;  %v1502_v11 = vld [vmem:[%s1924_s5 + $0x10] sm:$0xff]  }
  0x4e   : > { %1377 = vmatprep.subr.bf16.mxu1 %v1827_v15 }
 0x101   : > { %v1267_v16 = vpop.f32.mrb[0].mxu0 }
 0x102   : > { %v1268_v17 = vpop.f32.mrb[1].mxu0 }
 0x103   : > { %v1355_v18 = vpop.f32.mrb[0].mxu1  ;;  %v1269_v20 = vadd.f32 %v1268_v17, %v1267_v16  ;;  %v1270_v21 = vpop.f32.mrb[2].mxu0  ;;  %v1507_v16 = vld [vmem:[%s1924_s5 + $0x38] sm:$0xff]  }
 0x104   : > { %v607_v22 = vpop.f32.mrb[1].mxu1  ;;  %v1271_v23 = vpop.f32.mrb[3].mxu0  ;;  %v972_v17 = vld [vmem:[%s1726_s8 + $0x11] sm:$0xff] }
 0x105   : > { %v1356_v24 = vpop.f32.mrb[2].mxu1  ;;  %v1272_v25 = vadd.f32 %v1271_v23, %v1270_v21  ;;  %v559_v26 = vadd.f32 %v1269_v20, %v1186_v19 }
 0x106   : > { %v610_v27 = vpop.f32.mrb[3].mxu1 }
 0x107   : > { %v608_v28 = vadd.f32 %v607_v22, %v559_v26  ;;  %v562_v29 = vadd.f32 %v1272_v25, %v1186_v19 }
 0x109   : > { %624 = vst [vmem:[#allocation2 + $0x1] sm:$0xff] %v608_v28  ;;  %v611_v30 = vadd.f32 %v610_v27, %v562_v29  ;;  %v1273_v31 = vpop.f32.mrb[4].mxu0 }
 0x10a   : > { %v1274_v32 = vpop.f32.mrb[5].mxu0 }
 0x10b   : > { %625 = vst [vmem:[#allocation2 + $0x9] sm:$0xff] %v611_v30  ;;  %v1275_v33 = vadd.f32 %v1274_v32, %v1273_v31  ;;  %v1276_v34 = vpop.f32.mrb[6].mxu0  ;;  %v1211_v32 = vld [vmem:[%s1923_s4] ss:$0 sm:$0xff] }
 0x10c   : > { %v1277_v35 = vpop.f32.mrb[7].mxu0 }
 0x10d   : > { %v567_v36 = vadd.f32 %v1275_v33, %v1186_v19  ;;  %v1278_v37 = vadd.f32 %v1277_v35, %v1276_v34 }
 0x10f   : > { %v616_v38 = vadd.f32 %v1355_v18, %v567_v36  ;;  %v570_v39 = vadd.f32 %v1278_v37, %v1186_v19  ;;  %v973_v18 = vld [vmem:[%s1726_s8 + $0x19] sm:$0xff]  ;;  %s1184_s8 = sshll.u32 %s269_s9, 5 }
 0x110   : > { %v628_v40 = vld [vmem:[#allocation2] sm:$0xff]  ;;  %v975_v19 = vpack.c.bf16 %v973_v18, %v972_v17  ;;  %v1236_v36 = vld [vmem:[%s1925_s6] ss:$0 sm:$0xff]  ;;  %s271_s17 = scalar_lea.vmem [#allocation3], %s1184_s8  ;;  %s1512_s8 = sshll.u32 %s1573_s29, 4  ;;  %s1513_s8 = int_to_ptr.vmem [resolvable:$false] %s1512_s8 }
 0x111   : > { %626 = vst [vmem:[#allocation2 + $0x11] sm:$0xff] %v616_v38  ;;  %v619_v41 = vadd.f32 %v1356_v24, %v570_v39  ;;  %v633_v43 = vmax.f32 %v628_v40, 0.0  ;;  %s1118_s19 = sshll.u32 %s271_s17, 4  ;;  %s1514_s13 = scalar_lea.vmem %s1513_s8, 1024  ;;  %s1871_s19 = int_to_ptr.vmem [resolvable:$true] %s1118_s19 }
 0x112   : > { %v629_v42 = vld [vmem:[#allocation2 + $0x8] sm:$0xff]  ;;  %s1508_s23 = scalar_lea.vmem %s1871_s19, 512  ;;  %p1515_p0 = scmp.lt.s32.totalorder %s1871_s19, %s1513_s8 }
 0x113   : > { %627 = vst [vmem:[#allocation2 + $0x19] sm:$0xff] %v619_v41  ;;  %v634_v44 = vmax.f32 %v629_v42, 0.0  ;;  %p1509_p11 = scmp.ne.s32.totalorder %s1871_s19, %s1508_s23  ;;  %p1516_p1 = scmp.lt.s32.totalorder %s1514_s13, %s1508_s23 }
 0x115   : > { %v638_v45 = vpack.c.bf16 %v634_v44, %v633_v43  ;;  %p1510_p12 = pnand %p1509_p11, %p1654_p5  ;;  %p1517_p2 = por %p1516_p1, %p1515_p0 }
 0x117   : > { %v644_v47 = vshll.u32 %v638_v45, 16  ;;  %v642_v56 = vshrl.u32 %v638_v45, 16  ;;  %v666_v57 = vrot.slane %v638_v45, 1  ;;  %p1511_p13 = pneg %p1510_p12 }
 0x118   : > { %v630_v46 = vld [vmem:[#allocation2 + $0x10] sm:$0xff] }
 0x119   : > { %v635_v50 = vmax.f32 %v630_v46, 0.0  ;;  %v646_v53 = vrot.slane %v644_v47, 1  ;;  %p1518_p3 = pnand %p1517_p2, %p1511_p13 }
 0x11a   : > { %v631_v48 = vld [vmem:[#allocation2 + $0x18] sm:$0xff]  ;;  %v632_v49 = vld [vmem:[#allocation2 + $0x20] sm:$0x3] }
 0x11b   : > { %v636_v51 = vmax.f32 %v631_v48, 0.0  ;;  %v637_v52 = vmax.f32 %v632_v49, 0.0  ;;  %v647_v63 = vor.u32 %v646_v53, %v642_v56 }
 0x11d   : > { %v639_v54 = vpack.c.bf16 %v636_v51, %v635_v50  ;;  %v640_v55 = vpack.c.bf16 %v637_v52, %v637_v52 }
 0x11f   : > { %v667_v58 = vrot.slane %v639_v54, 1  ;;  %v669_v59 = vrot.slane %v640_v55, 1  ;;  %v649_v60 = vshll.u32 %v639_v54, 16  ;;  %v657_v0 = vshll.u32 %v640_v55, 16 }
 0x120   : > { %v653_v4 = vshrl.u32 %v639_v54, 16 }
 0x121   : > { %v668_v1 = vsel %vm317_vm1, %v666_v57, %v667_v58  ;;  %v670_v2 = vsel %vm317_vm1, %v667_v58, %v669_v59  ;;  %v651_v3 = vrot.slane %v649_v60, 1  ;;  %v659_v9 = vrot.slane %v657_v0, 1 }
 0x122   : > { %1373 = vmatprep.mubr.bf16.mxu1 %v668_v1 }
 0x123   : > { %1374 = vmatmul.mubr.bf16.vlgmr.msra.gmra.mrb[4].mxu1 %v670_v2  ;;  %v652_v7 = vsel %vm291_vm0, %v647_v63, %v651_v3  ;;  %v655_v8 = vor.u32 %v653_v4, %v651_v3 }
 0x124   : > { %1378 = vmatpush3.bf16.msra.mxu1 %v1827_v15  ;;  %904 = vmatprep.mubr.bf16.mxu0 %v652_v7  ;;  %v1506_v15 = vld [vmem:[%s1924_s5 + $0x30] sm:$0xff]  }
 0x125   : > { %905 = vmatmul.mubr.bf16.vlgmr.msra.gmra.mrb[8].mxu0 %v638_v45  ;;  %v660_v10 = vsel %vm291_vm0, %v655_v8, %v659_v9  ;;  %1379 = vmatprep.subr.bf16.mxu1 %v1501_v5 }
 0x126   : > { %912 = vmatprep.mubr.bf16.mxu0 %v660_v10  ;;  %1393 = vmatprep.mubr.bf16.mxu1 %v974_v6 }
 0x128   : > { %1380 = vmatpush3.bf16.msra.mxu1 %v1501_v5 }
 0x129   : > { %1381 = vmatprep.subr.bf16.mxu1 %v1502_v11 }
 0x12c   : > { %1382 = vmatpush3.bf16.msra.mxu1 %v1502_v11 }
 0x12d   : > { %913 = vmatmul.mubr.bf16.gmra.mrb[12].mxu0 %v639_v54  ;;  %1383 = vmatprep.subr.bf16.mxu1 %v1503_v12 }
 0x130   : > { %1384 = vmatpush3.bf16.msra.mxu1 %v1503_v12 }
 0x131   : > { %1385 = vmatprep.subr.bf16.mxu1 %v1504_v13 }
 0x134   : > { %1386 = vmatpush3.bf16.msra.mxu1 %v1504_v13 }
 0x135   : > { %1387 = vmatprep.subr.bf16.mxu1 %v1505_v14 }
 0x138   : > { %1388 = vmatpush3.bf16.msra.mxu1 %v1505_v14 }
 0x139   : > { %1389 = vmatprep.subr.bf16.mxu1 %v1506_v15 }
 0x13c   : > { %1390 = vmatpush3.bf16.msra.mxu1 %v1506_v15 }
 0x13d   : > { %1391 = vmatprep.subr.bf16.mxu1 %v1507_v16 }
 0x140   : > { %1392 = vmatpush3.bf16.msra.mxu1 %v1507_v16 }
 0x143   : > { %1394 = vmatmul.mubr.bf16.vlgmr.msra.gmra.mrb[4].mxu1 %v975_v19 }
 0x1f8   : > { %v1305_v20 = vpop.f32.mrb[8].mxu0 }
 0x1f9   : > { %v1306_v21 = vpop.f32.mrb[9].mxu0 }
 0x1fa   : > { %v1307_v22 = vadd.f32 %v1306_v21, %v1305_v20  ;;  %v1308_v23 = vpop.f32.mrb[10].mxu0 }
 0x1fb   : > { %v1309_v24 = vpop.f32.mrb[11].mxu0 }
 0x1fc   : > { %v1310_v25 = vadd.f32 %v1309_v24, %v1308_v23  ;;  %v907_v38 = vadd.f32 %v1307_v22, %v1211_v32 }
 0x1fe   : > { %v910_v34 = vadd.f32 %v1310_v25, %v1211_v32 }
 0x200   : > { %v1311_v26 = vpop.f32.mrb[12].mxu0  ;;  %v1403_v44 = vadd.f32 %v1236_v36, %v910_v34 }
 0x201   : > { %v1312_v27 = vpop.f32.mrb[13].mxu0 }
 0x202   : > { %v1313_v28 = vadd.f32 %v1312_v27, %v1311_v26  ;;  %v1314_v29 = vpop.f32.mrb[14].mxu0 }
 0x203   : > { %v1315_v30 = vpop.f32.mrb[15].mxu0 }
 0x204   : > { %v1316_v31 = vadd.f32 %v1315_v30, %v1314_v29  ;;  %v915_v35 = vadd.f32 %v1313_v28, %v1211_v32 }
 0x206   : > { %v918_v33 = vadd.f32 %v1316_v31, %v1211_v32 }
 0x208   : > { %v1401_v41 = vadd.f32 %v1236_v36, %v918_v33 }
 0x216   : > { %v1395_v37 = vpop.f32.mrb[4].mxu1 }
 0x217   : > { %v1397_v39 = vadd.f32 %v1395_v37, %v915_v35  ;;  %v1081_v40 = vpop.f32.mrb[5].mxu1 }
 0x218   : > { %v1399_v42 = vadd.f32 %v1081_v40, %v907_v38  ;;  %v1396_v43 = vpop.f32.mrb[6].mxu1 }
 0x219   : > { %v1398_v45 = vadd.f32 %v1397_v39, %v1236_v36  ;;  %v1402_v46 = vadd.f32 %v1401_v41, %v1396_v43  ;;  %v1084_v47 = vpop.f32.mrb[7].mxu1 }
 0x21a   : > { %v1400_v48 = vadd.f32 %v1399_v42, %v1236_v36  ;;  %v1404_v49 = vadd.f32 %v1403_v44, %v1084_v47 }
 0x21b   : > { %1102 = vst [vmem:[%s271_s17 + $0x10] sm:$0xff] %v1398_v45  ;;  %1103 = vst [vmem:[%s271_s17 + $0x18] sm:$0xff] %v1402_v46 }
 0x21c   : > { %1100 = vst [vmem:[%s271_s17] sm:$0xff] %v1400_v48  ;;  %1101 = vst [vmem:[%s271_s17 + $0x8] sm:$0xff] %v1404_v49 }
 0x21d   : > { %1521 = shalt.err (!%p1518_p3)
}
 0x21e   : > { %s1522_s9 = scalar_lea.hbm %s1876_s22, 512  ;;  %s1526_s16 = scalar_lea.hbm %s1926_s7, 1024 }
 0x21f   : > { %p1523_p4 = scmp.ne.s32.totalorder %s1876_s22, %s1522_s9  ;;  %p1527_p9 = scmp.lt.u32.totalorder %s1876_s22, %s1926_s7 }
 0x220   : > { %p1528_p10 = scmp.lt.u32.totalorder %s1526_s16, %s1522_s9  ;;  %p1530_p12 = scmp.lt.u32.totalorder %s1522_s9, %s1876_s22 }
 0x221   : > { %p1524_p7 = pnand %p1523_p4, %p1654_p5 }
 0x222   : > { %p1529_p11 = por %p1528_p10, %p1527_p9 }
 0x223   : > { %p1525_p8 = pneg %p1524_p7 }
 0x224   : > { %p1531_p13 = por %p1530_p12, %p1529_p11 }
 0x226   : > { %p1532_p0 = pnand %p1531_p13, %p1525_p8 }
 0x228   : > { %1535 = shalt.err (!%p1532_p0)
}
 0x229   : > { %s1574_s18 = smov 128   ;;  %s1575_s21 = smov 8  }
 0x22a   : > { %1410 = dma.vmem_to_hbm [thread:$0]  (%p1654_p5), %s1871_s19, 512, %s1876_s22, %s1878_s28, %s1574_s18, %s1574_s18, %s1575_s21  }
 0x22b PF: > { %p1416_p1 = scmp.ge.s32.totalorder %s1570_s27, 2  ;;  %s1133_s23 = sand.u32 1, %s1558_s24  }
 0x22c   : > { %s1134_s29 = scalar_lea.sflag [#allocation4], %s1133_s23 }
 0x22d   : > { %p1413_p2 = pnand %p1416_p1, %p1658_p6 }
 0x22f   : > { %1553 = dma.done.wait (!%p1413_p2), %s1134_s29, 512  }
 0x230   : > { %1555 = vsyncadd (!%p1413_p2), %s1134_s29, 4294966784  ;;  %p17_p3 = scmp.ge.s32.totalorder %s1641_s30, 4   ;;  %s1929_s24 = smov %s1562_s25 }
 0x231   : > { %s1930_s25 = smov %s1566_s26  ;;  %s1931_s26 = smov %s1652_s10 }
 0x232   : > { %s1932_s27 = smov %s1641_s30  ;;  %19 = sbr.rel (!%p17_p3) target bundleno = 3 (0x3), region = 83 }
 0x239   :  { %1139 = vsyncpa [#allocation4], 1 }
 0x23a   :  { %1141 = vsyncpa [#allocation4 + $0x1], 1 }

// kernel: run.4
= control target key start
LH: loop header
LB: loop body
LE: loop exit
PB: predicated region body
PF: predicated region fallthrough
CT: control target
= control target key end

     0   :  { %s1778_s24 = smov 0   ;;  %s2055_s0 = inlined_call_operand.vmem [shape: f32[2,34,128], index: 0, kind: input, shape index: {}]   ;;  %s2056_s1 = inlined_call_operand.vmem [shape: bf16[384,128], index: 1, kind: input, shape index: {}]   ;;  %s2057_s2 = inlined_call_operand.vmem [shape: f32[1,128], index: 2, kind: input, shape index: {}, may-alias: {2,4,6}]   ;;  %s2058_s3 = inlined_call_operand.vmem [shape: bf16[384,128], index: 3, kind: input, shape index: {}]   ;;  %s2059_s4 = inlined_call_operand.vmem [shape: f32[1,128], index: 4, kind: input, shape index: {}, may-alias: {2,4,6}]   ;;  %s2060_s5 = inlined_call_operand.vmem [shape: bf16[384,128], index: 5, kind: input, shape index: {}]   ;;  %s2061_s6 = inlined_call_operand.vmem [shape: f32[1,128], index: 6, kind: input, shape index: {}, may-alias: {2,4,6}]   ;;  %s2062_s7 = inlined_call_operand.vmem [shape: f32[2,32,128], index: 7, kind: output, shape index: {}]  }
   0x1 LB: > { %s1387_s25 = sadd.s32 4294967295, %s1735_s24   ;;  %p1391_p0 = scmp.ge.s32.totalorder %s1735_s24, 1  ;;  %s1735_s24 = sphi %s1778_s24, %s17_s24  }
   0x2   : > { %p237_p1 = scmp.lt.s32.totalorder %s1735_s24, 3 }
   0x4   : > { %p238_p2 = pnand %p1391_p0, %p237_p1 }
   0x5   : > { %v1657_v0 = vld [vmem:[%s2056_s1 + $0x40] sm:$0xff] (!%p238_p2)   ;;  %v1659_v2 = vld [vmem:[%s2056_s1 + $0x48] sm:$0xff] (!%p238_p2)   ;;  %v1662_v5 = vld [vmem:[%s2056_s1 + $0x50] sm:$0xff] (!%p238_p2)   ;;  %p269_p3 = scmp.lt.s32.totalorder (!%p238_p2), %s1387_s25, 1  ;;  %vm293_vm0 = vsmask.f32 (!%p238_p2), 7424 }
   0x6   : > { %241 = sbr.rel (%p238_p2) target bundleno = 764 (0x2fc), region = 48  ;;  %v1658_v1 = vld [vmem:[%s2056_s1] sm:$0xff] (!%p238_p2)   ;;  %1473 = vmatprep.subr.bf16.mxu0 (!%p238_p2), %v1657_v0  ;;  %v1661_v4 = vld [vmem:[%s2056_s1 + $0x8] sm:$0xff] (!%p238_p2)   ;;  %v1664_v7 = vld [vmem:[%s2056_s1 + $0x10] sm:$0xff] (!%p238_p2)   ;;  %vm319_vm1 = vcmask (!%p238_p2), 1046528   ;;  %v1737_v61 = vmov (!%p238_p2), 0.0  }
   0x7   : > { %1474 = vmatpush3.bf16.msra.mxu0 (!%p238_p2), %v1658_v1  ;;  %v1660_v3 = vld [vmem:[%s2056_s1 + $0x80] sm:$0xff] (!%p238_p2)   ;;  %v1663_v6 = vld [vmem:[%s2056_s1 + $0x88] sm:$0xff] (!%p238_p2)   ;;  %v1665_v8 = vld [vmem:[%s2056_s1 + $0x58] sm:$0xff] (!%p238_p2)   ;;  %624 = vst [vmem:[#allocation2] sm:$0x1] (!%p238_p2), %v1737_v61 }
   0x8   : > { %1475 = vmatprep.subr.bf16.mxu0 (!%p238_p2), %v1659_v2  ;;  %1587 = vmatprep.subr.bf16.mxu1 (!%p238_p2), %v1660_v3  ;;  %v1666_v9 = vld [vmem:[%s2056_s1 + $0x90] sm:$0xff] (!%p238_p2)   ;;  %v1667_v10 = vld [vmem:[%s2056_s1 + $0x18] sm:$0xff] (!%p238_p2)   ;;  %v1668_v11 = vld [vmem:[%s2056_s1 + $0x60] sm:$0xff] (!%p238_p2)   ;;  %625 = vst [vmem:[#allocation2 + $0x21] sm:$0x1] (!%p238_p2), %v1737_v61 }
   0x9   : > { %1588 = vmatpush3.bf16.msra.mxu1 (!%p238_p2), %v1660_v3  ;;  %v1669_v12 = vld [vmem:[%s2056_s1 + $0x98] sm:$0xff] (!%p238_p2)   ;;  %v1670_v13 = vld [vmem:[%s2056_s1 + $0x20] sm:$0xff] (!%p238_p2)   ;;  %v1671_v15 = vld [vmem:[%s2056_s1 + $0x68] sm:$0xff] (!%p238_p2)  }
   0xa   : > { %1589 = vmatprep.subr.bf16.mxu1 (!%p238_p2), %v1663_v6  ;;  %v1672_v14 = vld [vmem:[%s2056_s1 + $0xa0] sm:$0xff] (!%p238_p2)   ;;  %v1673_v16 = vld [vmem:[%s2056_s1 + $0x28] sm:$0xff] (!%p238_p2)   ;;  %v1674_v18 = vld [vmem:[%s2056_s1 + $0x70] sm:$0xff] (!%p238_p2)  }
   0xb   : > { %1476 = vmatpush3.bf16.msra.mxu0 (!%p238_p2), %v1661_v4  ;;  %v1675_v17 = vld [vmem:[%s2056_s1 + $0xa8] sm:$0xff] (!%p238_p2)   ;;  %v1676_v19 = vld [vmem:[%s2056_s1 + $0x30] sm:$0xff] (!%p238_p2)   ;;  %v1677_v20 = vld [vmem:[%s2056_s1 + $0x78] sm:$0xff] (!%p238_p2)  }
   0xc   : > { %1477 = vmatprep.subr.bf16.mxu0 (!%p238_p2), %v1662_v5  ;;  %v1678_v21 = vld [vmem:[%s2056_s1 + $0xb0] sm:$0xff] (!%p238_p2)   ;;  %v1679_v29 = vld [vmem:[%s2056_s1 + $0x38] sm:$0xff] (!%p238_p2)   ;;  %v1681_v54 = vld [vmem:[%s2058_s3 + $0x80] sm:$0xff] (!%p238_p2)  }
   0xd   : > { %1590 = vmatpush3.bf16.msra.mxu1 %v1663_v6  ;;  %s2064_s25 = smov (!%p269_p3, %s1387_s25), 1  ;;  %v1680_v33 = vld [vmem:[%s2056_s1 + $0xb8] sm:$0xff]   ;;  %v1682_v55 = vld [vmem:[%s2058_s3 + $0x40] sm:$0xff]   ;;  %v1684_v57 = vld [vmem:[%s2058_s3 + $0x88] sm:$0xff]  }
   0xe   : > { %1591 = vmatprep.subr.bf16.mxu1 %v1666_v9  ;;  %s1647_s14 = smul.u32 40, %s2064_s25  ;;  %v1683_v56 = vld [vmem:[%s2058_s3] sm:$0xff]   ;;  %v1685_v58 = vld [vmem:[%s2058_s3 + $0x48] sm:$0xff]   ;;  %v1687_v60 = vld [vmem:[%s2058_s3 + $0x90] sm:$0xff]   ;;  %s1472_s15 = sshll.u32 %s2064_s25, 5 }
   0xf   : > { %1478 = vmatpush3.bf16.msra.mxu0 %v1664_v7  ;;  %v1686_v59 = vld [vmem:[%s2058_s3 + $0x8] sm:$0xff]   ;;  %v1688_v62 = vld [vmem:[%s2058_s3 + $0x50] sm:$0xff]   ;;  %v1690_v0 = vld [vmem:[%s2058_s3 + $0x98] sm:$0xff]   ;;  %s278_s18 = scalar_lea.vmem %s2062_s7, %s1472_s15 }
  0x10   : > { %1479 = vmatprep.subr.bf16.mxu0 %v1665_v8  ;;  %s1853_s23 = scalar_lea.vmem %s2055_s0, %s1647_s14  ;;  %v1689_v63 = vld [vmem:[%s2058_s3 + $0x10] sm:$0xff]   ;;  %v1691_v1 = vld [vmem:[%s2058_s3 + $0x58] sm:$0xff]   ;;  %v1693_v3 = vld [vmem:[%s2058_s3 + $0xa0] sm:$0xff]  }
  0x11   : > { %1592 = vmatpush3.bf16.msra.mxu1 %v1666_v9  ;;  %v280_v22 = vld [vmem:[%s1853_s23] sm:$0xff]  ;;  %v281_v23 = vld [vmem:[%s1853_s23 + $0x8] sm:$0xff]  ;;  %v282_v24 = vld [vmem:[%s1853_s23 + $0x10] sm:$0xff] }
  0x12   : > { %1593 = vmatprep.subr.bf16.mxu1 %v1669_v12  ;;  %v283_v25 = vld [vmem:[%s1853_s23 + $0x18] sm:$0xff]  ;;  %v285_v26 = vmax.f32 %v280_v22, 0.0  ;;  %v286_v27 = vmax.f32 %v281_v23, 0.0  ;;  %v287_v28 = vmax.f32 %v282_v24, 0.0  ;;  %v284_v31 = vld [vmem:[%s1853_s23 + $0x20] sm:$0x3] }
  0x13   : > { %1480 = vmatpush3.bf16.msra.mxu0 %v1667_v10  ;;  %v288_v30 = vmax.f32 %v283_v25, 0.0  ;;  %v289_v34 = vmax.f32 %v284_v31, 0.0  ;;  %v1692_v2 = vld [vmem:[%s2058_s3 + $0x18] sm:$0xff]   ;;  %v1694_v4 = vld [vmem:[%s2058_s3 + $0x60] sm:$0xff]   ;;  %v1696_v6 = vld [vmem:[%s2058_s3 + $0xa8] sm:$0xff]  }
  0x14   : > { %1481 = vmatprep.subr.bf16.mxu0 %v1668_v11  ;;  %v290_v32 = vpack.c.bf16 %v286_v27, %v285_v26  ;;  %v1695_v5 = vld [vmem:[%s2058_s3 + $0x20] sm:$0xff]   ;;  %v1697_v7 = vld [vmem:[%s2058_s3 + $0x68] sm:$0xff]   ;;  %v1699_v8 = vld [vmem:[%s2058_s3 + $0xb0] sm:$0xff]  }
  0x15   : > { %1594 = vmatpush3.bf16.msra.mxu1 %v1669_v12  ;;  %v291_v35 = vpack.c.bf16 %v288_v30, %v287_v28  ;;  %v292_v39 = vpack.c.bf16 %v289_v34, %v289_v34  ;;  %v1698_v9 = vld [vmem:[%s2058_s3 + $0x28] sm:$0xff]   ;;  %v1700_v10 = vld [vmem:[%s2058_s3 + $0x70] sm:$0xff]   ;;  %v1702_v11 = vld [vmem:[%s2058_s3 + $0xb8] sm:$0xff]  }
  0x16   : > { %1595 = vmatprep.subr.bf16.mxu1 %v1672_v14  ;;  %v295_v36 = vshrl.u32 %v290_v32, 16  ;;  %v297_v37 = vshll.u32 %v290_v32, 16  ;;  %v320_v38 = vrot.slane %v290_v32, 1  ;;  %v1701_v12 = vld [vmem:[%s2058_s3 + $0x30] sm:$0xff]  }
  0x17   : > { %1482 = vmatpush3.bf16.msra.mxu0 %v1670_v13  ;;  %v302_v40 = vshll.u32 %v291_v35, 16  ;;  %v321_v41 = vrot.slane %v291_v35, 1  ;;  %v306_v42 = vshrl.u32 %v291_v35, 16  ;;  %v323_v44 = vrot.slane %v292_v39, 1  ;;  %v1703_v13 = vld [vmem:[%s2058_s3 + $0x78] sm:$0xff]  }
  0x18   : > { %1483 = vmatprep.subr.bf16.mxu0 %v1671_v15  ;;  %v299_v43 = vrot.slane %v297_v37, 1  ;;  %v310_v45 = vshll.u32 %v292_v39, 16 }
  0x19   : > { %1596 = vmatpush3.bf16.msra.mxu1 %v1672_v14  ;;  %v304_v46 = vrot.slane %v302_v40, 1  ;;  %v322_v47 = vsel %vm319_vm1, %v320_v38, %v321_v41  ;;  %v324_v52 = vsel %vm319_vm1, %v321_v41, %v323_v44  ;;  %v1704_v14 = vld [vmem:[%s2058_s3 + $0x38] sm:$0xff]  }
  0x1a   : > { %1597 = vmatprep.subr.bf16.mxu1 %v1675_v17  ;;  %v300_v48 = vor.u32 %v299_v43, %v295_v36  ;;  %1603 = vmatprep.mubr.bf16.mxu1 %v322_v47  ;;  %v312_v49 = vrot.slane %v310_v45, 1 }
  0x1b   : > { %1484 = vmatpush3.bf16.msra.mxu0 %v1673_v16  ;;  %v308_v50 = vor.u32 %v306_v42, %v304_v46 }
  0x1c   : > { %1485 = vmatprep.subr.bf16.mxu0 %v1674_v18  ;;  %v305_v51 = vsel %vm293_vm0, %v300_v48, %v304_v46  ;;  %v1395_v18 = vld [vmem:[%s2057_s2] ss:$0 sm:$0xff] }
  0x1d   : > { %1598 = vmatpush3.bf16.msra.mxu1 %v1675_v17  ;;  %558 = vmatprep.mubr.bf16.mxu0 %v305_v51  ;;  %v313_v53 = vsel %vm293_vm0, %v308_v50, %v312_v49 }
  0x1e   : > { %1599 = vmatprep.subr.bf16.mxu1 %v1678_v21 }
  0x1f   : > { %1486 = vmatpush3.bf16.msra.mxu0 %v1676_v19 }
  0x20   : > { %1487 = vmatprep.subr.bf16.mxu0 %v1677_v20 }
  0x21   : > { %1600 = vmatpush3.bf16.msra.mxu1 %v1678_v21 }
  0x22   : > { %1601 = vmatprep.subr.bf16.mxu1 %v1680_v33 }
  0x23   : > { %1488 = vmatpush3.bf16.msra.mxu0 %v1679_v29 }
  0x24   : > { %1511 = vmatprep.subr.bf16.mxu0 %v1682_v55 }
  0x25   : > { %1602 = vmatpush3.bf16.msra.mxu1 %v1680_v33 }
  0x26   : > { %559 = vmatmul.mubr.bf16.vlgmr.msra.gmra.mrb[0].mxu0 %v290_v32  ;;  %1607 = vmatprep.subr.bf16.mxu1 %v1681_v54 }
  0x27   : > { %566 = vmatprep.mubr.bf16.mxu0 %v313_v53  ;;  %1512 = vmatpush3.bf16.msra.mxu0 %v1683_v56 }
  0x28   : > { %1604 = vmatmul.mubr.bf16.vlgmr.msra.gmra.mrb[0].mxu1 %v324_v52  ;;  %1513 = vmatprep.subr.bf16.mxu0 %v1685_v58 }
  0x29   : > { %1608 = vmatpush3.bf16.msra.mxu1 %v1681_v54 }
  0x2a   : > { %1609 = vmatprep.subr.bf16.mxu1 %v1684_v57 }
  0x2b   : > { %1514 = vmatpush3.bf16.msra.mxu0 %v1686_v59 }
  0x2c   : > { %1515 = vmatprep.subr.bf16.mxu0 %v1688_v62 }
  0x2d   : > { %1610 = vmatpush3.bf16.msra.mxu1 %v1684_v57 }
  0x2e   : > { %567 = vmatmul.mubr.bf16.gmra.mrb[4].mxu0 %v291_v35  ;;  %1611 = vmatprep.subr.bf16.mxu1 %v1687_v60 }
  0x2f   : > { %1516 = vmatpush3.bf16.msra.mxu0 %v1689_v63 }
  0x30   : > { %1517 = vmatprep.subr.bf16.mxu0 %v1691_v1 }
  0x31   : > { %1612 = vmatpush3.bf16.msra.mxu1 %v1687_v60 }
  0x32   : > { %1613 = vmatprep.subr.bf16.mxu1 %v1690_v0 }
  0x33   : > { %1518 = vmatpush3.bf16.msra.mxu0 %v1692_v2 }
  0x34   : > { %1519 = vmatprep.subr.bf16.mxu0 %v1694_v4 }
  0x35   : > { %1614 = vmatpush3.bf16.msra.mxu1 %v1690_v0 }
  0x36   : > { %1615 = vmatprep.subr.bf16.mxu1 %v1693_v3 }
  0x37   : > { %1520 = vmatpush3.bf16.msra.mxu0 %v1695_v5 }
  0x38   : > { %1521 = vmatprep.subr.bf16.mxu0 %v1697_v7  ;;  %v1706_v7 = vld [vmem:[%s2060_s5 + $0x40] sm:$0xff]  }
  0x39   : > { %1616 = vmatpush3.bf16.msra.mxu1 %v1693_v3 }
  0x3a   : > { %1617 = vmatprep.subr.bf16.mxu1 %v1696_v6 }
  0x3b   : > { %1522 = vmatpush3.bf16.msra.mxu0 %v1698_v9  ;;  %v1708_v9 = vld [vmem:[%s2060_s5 + $0x88] sm:$0xff]  }
  0x3c   : > { %1523 = vmatprep.subr.bf16.mxu0 %v1700_v10  ;;  %v1709_v10 = vld [vmem:[%s2060_s5 + $0x48] sm:$0xff]  }
  0x3d   : > { %1618 = vmatpush3.bf16.msra.mxu1 %v1696_v6  ;;  %v1705_v6 = vld [vmem:[%s2060_s5 + $0x80] sm:$0xff]  }
  0x3e   : > { %1619 = vmatprep.subr.bf16.mxu1 %v1699_v8 }
  0x3f   : > { %1524 = vmatpush3.bf16.msra.mxu0 %v1701_v12  ;;  %v1711_v12 = vld [vmem:[%s2060_s5 + $0x90] sm:$0xff]  }
  0x40   : > { %1525 = vmatprep.subr.bf16.mxu0 %v1703_v13  ;;  %v1712_v13 = vld [vmem:[%s2060_s5 + $0x50] sm:$0xff]  }
  0x41   : > { %1620 = vmatpush3.bf16.msra.mxu1 %v1699_v8  ;;  %v1707_v8 = vld [vmem:[%s2060_s5] sm:$0xff]  }
  0x42   : > { %1621 = vmatprep.subr.bf16.mxu1 %v1702_v11 }
  0x43   : > { %1526 = vmatpush3.bf16.msra.mxu0 %v1704_v14  ;;  %v1713_v14 = vld [vmem:[%s2060_s5 + $0x10] sm:$0xff]  }
  0x44   : > { %1549 = vmatprep.subr.bf16.mxu0 %v1706_v7 }
  0x45   : > { %1622 = vmatpush3.bf16.msra.mxu1 %v1702_v11  ;;  %v1710_v11 = vld [vmem:[%s2060_s5 + $0x8] sm:$0xff]  }
  0x46   : > { %1627 = vmatprep.subr.bf16.mxu1 %v1705_v6 }
  0xf9   : > { %v1489_v15 = vpop.f32.mrb[0].mxu0 }
  0xfa   : > { %v1490_v16 = vpop.f32.mrb[1].mxu0 }
  0xfb   : > { %v1605_v17 = vpop.f32.mrb[0].mxu1  ;;  %v1491_v19 = vadd.f32 %v1490_v16, %v1489_v15  ;;  %v1492_v20 = vpop.f32.mrb[2].mxu0  ;;  %v1714_v15 = vld [vmem:[%s2060_s5 + $0x98] sm:$0xff]  }
  0xfc   : > { %v609_v21 = vpop.f32.mrb[1].mxu1  ;;  %v1493_v22 = vpop.f32.mrb[3].mxu0  ;;  %v1715_v16 = vld [vmem:[%s2060_s5 + $0x58] sm:$0xff]  }
  0xfd   : > { %v1606_v23 = vpop.f32.mrb[2].mxu1  ;;  %v1494_v24 = vadd.f32 %v1493_v22, %v1492_v20  ;;  %v561_v25 = vadd.f32 %v1491_v19, %v1395_v18  ;;  %v1718_v19 = vld [vmem:[%s2060_s5 + $0x60] sm:$0xff]   ;;  %v1721_v22 = vld [vmem:[%s2060_s5 + $0x68] sm:$0xff]  }
  0xfe   : > { %v612_v26 = vpop.f32.mrb[3].mxu1  ;;  %v1719_v20 = vld [vmem:[%s2060_s5 + $0x20] sm:$0xff]  }
  0xff   : > { %v610_v27 = vadd.f32 %v609_v21, %v561_v25  ;;  %v564_v28 = vadd.f32 %v1494_v24, %v1395_v18  ;;  %v1720_v21 = vld [vmem:[%s2060_s5 + $0xa8] sm:$0xff]   ;;  %v1724_v25 = vld [vmem:[%s2060_s5 + $0x70] sm:$0xff]  }
 0x100   : > { %v1722_v24 = vld [vmem:[%s2060_s5 + $0x28] sm:$0xff]  }
 0x101   : > { %626 = vst [vmem:[#allocation2 + $0x1] sm:$0xff] %v610_v27  ;;  %v613_v29 = vadd.f32 %v612_v26, %v564_v28  ;;  %v1495_v30 = vpop.f32.mrb[4].mxu0  ;;  %v1726_v26 = vld [vmem:[%s2060_s5 + $0xb8] sm:$0xff]   ;;  %v1725_v27 = vld [vmem:[%s2060_s5 + $0x30] sm:$0xff]  }
 0x102   : > { %v1496_v31 = vpop.f32.mrb[5].mxu0  ;;  %v1727_v28 = vld [vmem:[%s2060_s5 + $0x78] sm:$0xff]  }
 0x103   : > { %627 = vst [vmem:[#allocation2 + $0x9] sm:$0xff] %v613_v29  ;;  %v1497_v32 = vadd.f32 %v1496_v31, %v1495_v30  ;;  %v1498_v33 = vpop.f32.mrb[6].mxu0  ;;  %v1728_v29 = vld [vmem:[%s2060_s5 + $0x38] sm:$0xff]  }
 0x104   : > { %v1499_v34 = vpop.f32.mrb[7].mxu0 }
 0x105   : > { %v569_v35 = vadd.f32 %v1497_v32, %v1395_v18  ;;  %v1500_v36 = vadd.f32 %v1499_v34, %v1498_v33  ;;  %v1420_v34 = vld [vmem:[%s2059_s4] ss:$0 sm:$0xff] }
 0x107   : > { %v618_v37 = vadd.f32 %v1605_v17, %v569_v35  ;;  %v572_v38 = vadd.f32 %v1500_v36, %v1395_v18  ;;  %v1716_v17 = vld [vmem:[%s2060_s5 + $0x18] sm:$0xff]   ;;  %v1717_v18 = vld [vmem:[%s2060_s5 + $0xa0] sm:$0xff]  }
 0x108   : > { %v630_v39 = vld [vmem:[#allocation2] sm:$0xff] }
 0x109   : > { %628 = vst [vmem:[#allocation2 + $0x11] sm:$0xff] %v618_v37  ;;  %v621_v40 = vadd.f32 %v1606_v23, %v572_v38  ;;  %972 = vst [vmem:[#allocation2] sm:$0x1] %v1737_v61  ;;  %v635_v42 = vmax.f32 %v630_v39, 0.0  ;;  %v1723_v23 = vld [vmem:[%s2060_s5 + $0xb0] sm:$0xff]  }
 0x10a   : > { %v631_v41 = vld [vmem:[#allocation2 + $0x8] sm:$0xff] }
 0x10b   : > { %629 = vst [vmem:[#allocation2 + $0x19] sm:$0xff] %v621_v40  ;;  %v636_v43 = vmax.f32 %v631_v41, 0.0 }
 0x10d   : > { %v640_v44 = vpack.c.bf16 %v636_v43, %v635_v42 }
 0x10f   : > { %v646_v46 = vshll.u32 %v640_v44, 16  ;;  %v644_v55 = vshrl.u32 %v640_v44, 16  ;;  %v668_v56 = vrot.slane %v640_v44, 1 }
 0x110   : > { %v632_v45 = vld [vmem:[#allocation2 + $0x10] sm:$0xff] }
 0x111   : > { %v637_v49 = vmax.f32 %v632_v45, 0.0  ;;  %v648_v52 = vrot.slane %v646_v46, 1 }
 0x112   : > { %v633_v47 = vld [vmem:[#allocation2 + $0x18] sm:$0xff]  ;;  %v634_v48 = vld [vmem:[#allocation2 + $0x20] sm:$0x3] }
 0x113   : > { %v638_v50 = vmax.f32 %v633_v47, 0.0  ;;  %v639_v51 = vmax.f32 %v634_v48, 0.0  ;;  %973 = vst [vmem:[#allocation2 + $0x21] sm:$0x1] %v1737_v61  ;;  %v649_v60 = vor.u32 %v648_v52, %v644_v55 }
 0x115   : > { %v641_v53 = vpack.c.bf16 %v638_v50, %v637_v49  ;;  %v642_v54 = vpack.c.bf16 %v639_v51, %v639_v51 }
 0x117   : > { %v669_v57 = vrot.slane %v641_v53, 1  ;;  %v671_v58 = vrot.slane %v642_v54, 1  ;;  %v651_v59 = vshll.u32 %v641_v53, 16  ;;  %v659_v62 = vshll.u32 %v642_v54, 16 }
 0x118   : > { %v655_v2 = vshrl.u32 %v641_v53, 16 }
 0x119   : > { %v670_v63 = vsel %vm319_vm1, %v668_v56, %v669_v57  ;;  %v672_v0 = vsel %vm319_vm1, %v669_v57, %v671_v58  ;;  %v653_v1 = vrot.slane %v651_v59, 1  ;;  %v661_v4 = vrot.slane %v659_v62, 1 }
 0x11a   : > { %1623 = vmatprep.mubr.bf16.mxu1 %v670_v63 }
 0x11b   : > { %1624 = vmatmul.mubr.bf16.vlgmr.msra.gmra.mrb[4].mxu1 %v672_v0  ;;  %v654_v61 = vsel %vm293_vm0, %v649_v60, %v653_v1  ;;  %v657_v3 = vor.u32 %v655_v2, %v653_v1 }
 0x11c   : > { %906 = vmatprep.mubr.bf16.mxu0 %v654_v61  ;;  %1628 = vmatpush3.bf16.msra.mxu1 %v1705_v6 }
 0x11d   : > { %907 = vmatmul.mubr.bf16.vlgmr.msra.gmra.mrb[8].mxu0 %v640_v44  ;;  %v662_v5 = vsel %vm293_vm0, %v657_v3, %v661_v4  ;;  %1629 = vmatprep.subr.bf16.mxu1 %v1708_v9 }
 0x11e   : > { %914 = vmatprep.mubr.bf16.mxu0 %v662_v5  ;;  %1550 = vmatpush3.bf16.msra.mxu0 %v1707_v8 }
 0x11f   : > { %1551 = vmatprep.subr.bf16.mxu0 %v1709_v10 }
 0x120   : > { %1630 = vmatpush3.bf16.msra.mxu1 %v1708_v9 }
 0x121   : > { %1631 = vmatprep.subr.bf16.mxu1 %v1711_v12 }
 0x122   : > { %1552 = vmatpush3.bf16.msra.mxu0 %v1710_v11 }
 0x123   : > { %1553 = vmatprep.subr.bf16.mxu0 %v1712_v13 }
 0x124   : > { %1632 = vmatpush3.bf16.msra.mxu1 %v1711_v12 }
 0x125   : > { %915 = vmatmul.mubr.bf16.gmra.mrb[12].mxu0 %v641_v53  ;;  %1633 = vmatprep.subr.bf16.mxu1 %v1714_v15 }
 0x126   : > { %1554 = vmatpush3.bf16.msra.mxu0 %v1713_v14 }
 0x127   : > { %1555 = vmatprep.subr.bf16.mxu0 %v1715_v16 }
 0x128   : > { %1634 = vmatpush3.bf16.msra.mxu1 %v1714_v15 }
 0x129   : > { %1635 = vmatprep.subr.bf16.mxu1 %v1717_v18 }
 0x12a   : > { %1556 = vmatpush3.bf16.msra.mxu0 %v1716_v17 }
 0x12b   : > { %1557 = vmatprep.subr.bf16.mxu0 %v1718_v19 }
 0x12c   : > { %1636 = vmatpush3.bf16.msra.mxu1 %v1717_v18 }
 0x12d   : > { %1637 = vmatprep.subr.bf16.mxu1 %v1720_v21 }
 0x12e   : > { %1558 = vmatpush3.bf16.msra.mxu0 %v1719_v20 }
 0x12f   : > { %1559 = vmatprep.subr.bf16.mxu0 %v1721_v22 }
 0x130   : > { %1638 = vmatpush3.bf16.msra.mxu1 %v1720_v21 }
 0x131   : > { %1639 = vmatprep.subr.bf16.mxu1 %v1723_v23 }
 0x132   : > { %1560 = vmatpush3.bf16.msra.mxu0 %v1722_v24 }
 0x133   : > { %1561 = vmatprep.subr.bf16.mxu0 %v1724_v25  ;;  %v1445_v25 = vld [vmem:[%s2061_s6] ss:$0 sm:$0xff] }
 0x134   : > { %1640 = vmatpush3.bf16.msra.mxu1 %v1723_v23 }
 0x135   : > { %1641 = vmatprep.subr.bf16.mxu1 %v1726_v26 }
 0x136   : > { %1562 = vmatpush3.bf16.msra.mxu0 %v1725_v27 }
 0x137   : > { %1563 = vmatprep.subr.bf16.mxu0 %v1727_v28 }
 0x138   : > { %1642 = vmatpush3.bf16.msra.mxu1 %v1726_v26 }
 0x13a   : > { %1564 = vmatpush3.bf16.msra.mxu0 %v1728_v29 }
 0x1ee   : > { %v1625_v30 = vpop.f32.mrb[4].mxu1 }
 0x1ef   : > { %v957_v31 = vpop.f32.mrb[5].mxu1 }
 0x1f0   : > { %v1527_v32 = vpop.f32.mrb[8].mxu0  ;;  %v1626_v33 = vpop.f32.mrb[6].mxu1 }
 0x1f1   : > { %v1528_v35 = vpop.f32.mrb[9].mxu0  ;;  %v960_v36 = vpop.f32.mrb[7].mxu1 }
 0x1f2   : > { %v1529_v37 = vadd.f32 %v1528_v35, %v1527_v32  ;;  %v1530_v38 = vpop.f32.mrb[10].mxu0 }
 0x1f3   : > { %v1531_v39 = vpop.f32.mrb[11].mxu0 }
 0x1f4   : > { %v909_v40 = vadd.f32 %v1529_v37, %v1420_v34  ;;  %v1532_v41 = vadd.f32 %v1531_v39, %v1530_v38 }
 0x1f6   : > { %v958_v42 = vadd.f32 %v957_v31, %v909_v40  ;;  %v912_v43 = vadd.f32 %v1532_v41, %v1420_v34 }
 0x1f8   : > { %974 = vst [vmem:[#allocation2 + $0x1] sm:$0xff] %v958_v42  ;;  %v961_v44 = vadd.f32 %v960_v36, %v912_v43  ;;  %v1533_v45 = vpop.f32.mrb[12].mxu0  ;;  %v1321_v36 = vld [vmem:[%s1853_s23 + $0x9] sm:$0xff] }
 0x1f9   : > { %v1534_v46 = vpop.f32.mrb[13].mxu0 }
 0x1fa   : > { %975 = vst [vmem:[#allocation2 + $0x9] sm:$0xff] %v961_v44  ;;  %v1535_v47 = vadd.f32 %v1534_v46, %v1533_v45  ;;  %v1536_v48 = vpop.f32.mrb[14].mxu0 }
 0x1fb   : > { %v1537_v49 = vpop.f32.mrb[15].mxu0 }
 0x1fc   : > { %v917_v50 = vadd.f32 %v1535_v47, %v1420_v34  ;;  %v1538_v51 = vadd.f32 %v1537_v49, %v1536_v48  ;;  %v1322_v47 = vld [vmem:[%s1853_s23 + $0x11] sm:$0xff] }
 0x1fe   : > { %v966_v52 = vadd.f32 %v1625_v30, %v917_v50  ;;  %v920_v53 = vadd.f32 %v1538_v51, %v1420_v34  ;;  %v1323_v50 = vld [vmem:[%s1853_s23 + $0x19] sm:$0xff] }
 0x1ff   : > { %v978_v54 = vld [vmem:[#allocation2] sm:$0xff] }
 0x200   : > { %976 = vst [vmem:[#allocation2 + $0x11] sm:$0xff] %v966_v52  ;;  %v969_v55 = vadd.f32 %v1626_v33, %v920_v53  ;;  %v983_v57 = vmax.f32 %v978_v54, 0.0  ;;  %v1320_v33 = vld [vmem:[%s1853_s23 + $0x1] sm:$0xff] }
 0x201   : > { %v979_v56 = vld [vmem:[#allocation2 + $0x8] sm:$0xff] }
 0x202   : > { %977 = vst [vmem:[#allocation2 + $0x19] sm:$0xff] %v969_v55  ;;  %v984_v58 = vmax.f32 %v979_v56, 0.0 }
 0x204   : > { %v988_v59 = vpack.c.bf16 %v984_v58, %v983_v57 }
 0x206   : > { %v994_v62 = vshll.u32 %v988_v59, 16  ;;  %v992_v6 = vshrl.u32 %v988_v59, 16  ;;  %v1016_v7 = vrot.slane %v988_v59, 1 }
 0x207   : > { %v980_v60 = vld [vmem:[#allocation2 + $0x10] sm:$0xff] }
 0x208   : > { %v985_v1 = vmax.f32 %v980_v60, 0.0  ;;  %v996_v3 = vrot.slane %v994_v62, 1 }
 0x209   : > { %v981_v63 = vld [vmem:[#allocation2 + $0x18] sm:$0xff]  ;;  %v982_v0 = vld [vmem:[#allocation2 + $0x20] sm:$0x3] }
 0x20a   : > { %v986_v2 = vmax.f32 %v981_v63, 0.0  ;;  %v987_v61 = vmax.f32 %v982_v0, 0.0  ;;  %v997_v11 = vor.u32 %v996_v3, %v992_v6 }
 0x20c   : > { %v989_v4 = vpack.c.bf16 %v986_v2, %v985_v1  ;;  %v990_v5 = vpack.c.bf16 %v987_v61, %v987_v61 }
 0x20e   : > { %v1017_v8 = vrot.slane %v989_v4, 1  ;;  %v1019_v9 = vrot.slane %v990_v5, 1  ;;  %v999_v10 = vshll.u32 %v989_v4, 16  ;;  %v1007_v12 = vshll.u32 %v990_v5, 16 }
 0x20f   : > { %v1003_v16 = vshrl.u32 %v989_v4, 16 }
 0x210   : > { %v1018_v13 = vsel %vm319_vm1, %v1016_v7, %v1017_v8  ;;  %v1020_v14 = vsel %vm319_vm1, %v1017_v8, %v1019_v9  ;;  %v1001_v15 = vrot.slane %v999_v10, 1  ;;  %v1009_v19 = vrot.slane %v1007_v12, 1 }
 0x211   : > { %1643 = vmatprep.mubr.bf16.mxu1 %v1018_v13 }
 0x212   : > { %1644 = vmatmul.mubr.bf16.vlgmr.msra.gmra.mrb[8].mxu1 %v1020_v14  ;;  %v1002_v17 = vsel %vm293_vm0, %v997_v11, %v1001_v15  ;;  %v1005_v18 = vor.u32 %v1003_v16, %v1001_v15 }
 0x213   : > { %1254 = vmatprep.mubr.bf16.mxu0 %v1002_v17 }
 0x214   : > { %1255 = vmatmul.mubr.bf16.vlgmr.msra.gmra.mrb[16].mxu0 %v988_v59  ;;  %v1010_v20 = vsel %vm293_vm0, %v1005_v18, %v1009_v19 }
 0x215   : > { %1262 = vmatprep.mubr.bf16.mxu0 %v1010_v20 }
 0x21c   : > { %1263 = vmatmul.mubr.bf16.gmra.mrb[20].mxu0 %v989_v4 }
 0x2e5   : > { %v1645_v21 = vpop.f32.mrb[8].mxu1 }
 0x2e6   : > { %v1305_v22 = vpop.f32.mrb[9].mxu1 }
 0x2e7   : > { %v1565_v23 = vpop.f32.mrb[16].mxu0  ;;  %v1646_v24 = vpop.f32.mrb[10].mxu1 }
 0x2e8   : > { %v1566_v26 = vpop.f32.mrb[17].mxu0  ;;  %v1308_v27 = vpop.f32.mrb[11].mxu1 }
 0x2e9   : > { %v1567_v28 = vadd.f32 %v1566_v26, %v1565_v23  ;;  %v1568_v29 = vpop.f32.mrb[18].mxu0 }
 0x2ea   : > { %v1569_v30 = vpop.f32.mrb[19].mxu0 }
 0x2eb   : > { %v1257_v31 = vadd.f32 %v1567_v28, %v1445_v25  ;;  %v1570_v32 = vadd.f32 %v1569_v30, %v1568_v29 }
 0x2ed   : > { %v1306_v34 = vadd.f32 %v1305_v22, %v1257_v31  ;;  %v1260_v35 = vadd.f32 %v1570_v32, %v1445_v25 }
 0x2ef   : > { %v1324_v37 = vadd.f32 %v1320_v33, %v1306_v34  ;;  %v1309_v38 = vadd.f32 %v1308_v27, %v1260_v35  ;;  %v1571_v39 = vpop.f32.mrb[20].mxu0 }
 0x2f0   : > { %v1572_v40 = vpop.f32.mrb[21].mxu0 }
 0x2f1   : > { %1328 = vst [vmem:[%s278_s18] sm:$0xff] %v1324_v37  ;;  %v1325_v41 = vadd.f32 %v1321_v36, %v1309_v38  ;;  %v1573_v42 = vadd.f32 %v1572_v40, %v1571_v39  ;;  %v1574_v43 = vpop.f32.mrb[22].mxu0 }
 0x2f2   : > { %v1575_v44 = vpop.f32.mrb[23].mxu0 }
 0x2f3   : > { %1329 = vst [vmem:[%s278_s18 + $0x8] sm:$0xff] %v1325_v41  ;;  %v1265_v45 = vadd.f32 %v1573_v42, %v1445_v25  ;;  %v1576_v46 = vadd.f32 %v1575_v44, %v1574_v43 }
 0x2f5   : > { %v1314_v48 = vadd.f32 %v1645_v21, %v1265_v45  ;;  %v1268_v49 = vadd.f32 %v1576_v46, %v1445_v25 }
 0x2f7   : > { %v1326_v51 = vadd.f32 %v1322_v47, %v1314_v48  ;;  %v1317_v52 = vadd.f32 %v1646_v24, %v1268_v49 }
 0x2f9   : > { %1330 = vst [vmem:[%s278_s18 + $0x10] sm:$0xff] %v1326_v51  ;;  %v1327_v53 = vadd.f32 %v1323_v50, %v1317_v52 }
 0x2fb   : > { %1331 = vst [vmem:[%s278_s18 + $0x18] sm:$0xff] %v1327_v53 }
 0x2fc PF: > { %s17_s24 = sadd.s32 1, %s1735_s24  }
 0x2fd   : > { %p14_p4 = scmp.ge.s32.totalorder %s17_s24, 4  }
 0x2ff   :  { %16 = sbr.rel (!%p14_p4) target bundleno = 1 (0x1), region = 78 }

</bundles_post_ra>
